<compile_context>
chip_gen: v6e
topology: v6e:2x2x1
jax: 0.10.0
libtpu: 0.0.40
codegen_flags: <defaults>
</compile_context>

<pallas_src>
import functools

import jax
import jax.numpy as jnp
from jax.experimental import pallas as pl
from jax.experimental.pallas import tpu as pltpu


def _round_up(x, m):
    return (x + m - 1) // m * m


def _default_images_per_step(n):
    # Batch images per grid step, but keep >= 2 parallel grid steps when possible (v7x dual-TC).
    cap = max(1, min(8, n // 2))
    for b in range(cap, 0, -1):
        if n % b == 0:
            return b
    return 1


def _double_conv_kernel(x_ref, w1_ref, b1_ref, w2_ref, b2_ref, o_ref,
                        xin1_ref, hpad_ref, xin2_ref, *, H, W, HW_p, pad_top, B):
    # x_ref:    (B, Cin_p, Lp)    bf16 flattened, zero-halo-padded input (interior at pad_top)
    # w1_ref:   (Cmid_p, 9*Cin_p) bf16, K ordered (tap, channel)
    # b1_ref:   (Cmid_p, 1)       f32
    # w2_ref:   (Cout_p, 9*Cmid_p) bf16
    # b2_ref:   (Cout_p, 1)       f32
    # o_ref:    (B, Cout_p, HW_p) lane-dense f32 output (HW on lanes)
    # scratch:  xin1 (9*Cin_p, B*HW_p) bf16, hpad (B, Cmid_p, Lp) bf16, xin2 (9*Cmid_p, B*HW_p) bf16
    HW = H * W
    cin_p = x_ref.shape[1]
    cmid_p = hpad_ref.shape[1]
    Lp = hpad_ref.shape[2]

    # Column-edge bool masks (built once): with spatial flattened onto one lane axis the
    # dx=-1 / dx=+1 taps wrap across row boundaries; those lanes are the conv's zero padding.
    col = jax.lax.broadcasted_iota(jnp.int32, (1, HW), 1) % W
    not_left = col != 0            # kills wrapped reads of the dx=0 tap
    not_right = col != (W - 1)     # kills wrapped reads of the dx=2 tap

    def fill_taps(src_ref, b_img, dst_ref, c):
        # src_ref: (B, c, Lp) bf16 padded-flat activation; per-tap vld only (no full load).
        # dst_ref: (9*c, B*HW_p) bf16 im2col scratch, K-axis ordered (tap, channel).
        for t in range(9):
            dy, dx = t // 3, t % 3
            base = pad_top + (dy - 1) * W + (dx - 1)   # static lane offset of this tap
            tap = src_ref[b_img, :, base:base + HW]    # bounded live-range load
            if dx == 0:
                tap = jnp.where(not_left, tap, jnp.zeros_like(tap))
            elif dx == 2:
                tap = jnp.where(not_right, tap, jnp.zeros_like(tap))
            dst_ref[t * c:(t + 1) * c, b_img * HW_p:b_img * HW_p + HW] = tap
        if HW_p > HW:   # lane padding columns (static branch; no-op when HW is 128-aligned)
            dst_ref[:, b_img * HW_p + HW:(b_img + 1) * HW_p] = jnp.zeros(
                (dst_ref.shape[0], HW_p - HW), dst_ref.dtype)

    # ---- conv1: one (Cmid_p, 9*Cin_p) x (9*Cin_p, B*HW_p) bf16 MXU contraction, f32 acc ----
    for b in range(B):
        fill_taps(x_ref, b, xin1_ref, cin_p)
    h = jnp.dot(w1_ref[...], xin1_ref[...], preferred_element_type=jnp.float32)
    h = jnp.maximum(h + b1_ref[...], 0.0)              # bias + ReLU in f32; padded rows stay 0

    # ---- re-pad conv1 output in VMEM (no HBM round trip) ----
    # Zero only the halo lane columns; the interior is fully overwritten each grid step by an
    # aligned full-row store (pad_top and HW are 128-lane aligned, cmid_p is a bf16 tile).
    hpad_ref[:, :, 0:pad_top] = jnp.zeros((B, cmid_p, pad_top), hpad_ref.dtype)
    hpad_ref[:, :, pad_top + HW:] = jnp.zeros((B, cmid_p, Lp - pad_top - HW), hpad_ref.dtype)
    for b in range(B):
        hpad_ref[b, :, pad_top:pad_top + HW] = (
            h[:, b * HW_p:b * HW_p + HW].astype(hpad_ref.dtype))

    # ---- conv2, same structure ----
    for b in range(B):
        fill_taps(hpad_ref, b, xin2_ref, cmid_p)
    y = jnp.dot(w2_ref[...], xin2_ref[...], preferred_element_type=jnp.float32)
    y = jnp.maximum(y + b2_ref[...], 0.0)
    for b in range(B):
        o_ref[b] = y[:, b * HW_p:(b + 1) * HW_p].astype(o_ref.dtype)


def double_conv_forward(x_nchw, w1_oihw, b1, w2_oihw, b2, *, images_per_step=None):
    """Matches double_conv.forward (NCHW in / NCHW out); both conv+ReLU stages in one kernel."""
    N, Cin, H, W = x_nchw.shape
    Cmid = w1_oihw.shape[0]
    Cout = w2_oihw.shape[0]

    HW = H * W
    HW_p = _round_up(HW, 128)                      # lane-dense output width
    pad_top = _round_up(W + 1, 128)                # 128-aligned interior start (top halo >= W+1)
    Lp = pad_top + _round_up(HW + W + 1, 128)      # bottom halo >= W+1, Lp a 128 multiple
    Cin_p = _round_up(Cin, 16)                     # bf16 sublane tile is 16 rows
    Cmid_p = _round_up(Cmid, 16)
    Cout_p = _round_up(Cout, 8)                    # f32 output sublane tile

    B = images_per_step or _default_images_per_step(N)
    assert N % B == 0, (N, B)

    # Glue (~1x input bytes in bf16, no 9x blowup): flatten spatial, add zero halos, round
    # channels up to the packing tile.
    x_flat = x_nchw.reshape(N, Cin, HW).astype(jnp.bfloat16)
    xpad = jnp.pad(x_flat, ((0, 0), (0, Cin_p - Cin), (pad_top, Lp - pad_top - HW)))

    # Pre-transform weights once into the in-kernel layout: (O_p, 9*I_p) bf16 with the
    # contraction axis ordered (tap, channel).  Output channels of conv1 are zero-padded so
    # hpad's padded rows arrive as zeros from the dot (no separate row memset).
    w1r = jnp.pad(jnp.transpose(w1_oihw, (0, 2, 3, 1)),
                  ((0, Cmid_p - Cmid), (0, 0), (0, 0), (0, Cin_p - Cin))
                  ).reshape(Cmid_p, 9 * Cin_p).astype(jnp.bfloat16)
    w2r = jnp.pad(jnp.transpose(w2_oihw, (0, 2, 3, 1)),
                  ((0, Cout_p - Cout), (0, 0), (0, 0), (0, Cmid_p - Cmid))
                  ).reshape(Cout_p, 9 * Cmid_p).astype(jnp.bfloat16)
    b1r = jnp.pad(b1, (0, Cmid_p - Cmid)).reshape(Cmid_p, 1).astype(jnp.float32)
    b2r = jnp.pad(b2, (0, Cout_p - Cout)).reshape(Cout_p, 1).astype(jnp.float32)

    kernel = functools.partial(_double_conv_kernel, H=H, W=W, HW_p=HW_p,
                               pad_top=pad_top, B=B)

    out = pl.pallas_call(
        kernel,
        out_shape=jax.ShapeDtypeStruct((N, Cout_p, HW_p), x_nchw.dtype),
        grid=(N // B,),
        in_specs=[
            pl.BlockSpec((B, Cin_p, Lp), lambda n: (n, 0, 0)),
            pl.BlockSpec((Cmid_p, 9 * Cin_p), lambda n: (0, 0)),   # VMEM-resident weights
            pl.BlockSpec((Cmid_p, 1), lambda n: (0, 0)),
            pl.BlockSpec((Cout_p, 9 * Cmid_p), lambda n: (0, 0)),
            pl.BlockSpec((Cout_p, 1), lambda n: (0, 0)),
        ],
        out_specs=pl.BlockSpec((B, Cout_p, HW_p), lambda n: (n, 0, 0)),
        scratch_shapes=[
            pltpu.VMEM((9 * Cin_p, B * HW_p), jnp.bfloat16),   # im2col RHS, conv1
            pltpu.VMEM((B, Cmid_p, Lp), jnp.bfloat16),         # re-padded conv1 output
            pltpu.VMEM((9 * Cmid_p, B * HW_p), jnp.bfloat16),  # im2col RHS, conv2
        ],
        compiler_params=pltpu.CompilerParams(
            dimension_semantics=("parallel",)),
    )(xpad, w1r, b1r, w2r, b2r)

    # HW lanes collapse straight back to (H, W); slice off channel/lane padding (no-op here).
    return out[:, :Cout, :HW].reshape(N, Cout, H, W)


def _reference_double_conv_bf16(x_nchw, w1_oihw, b1, w2_oihw, b2):
    # Emulates the kernel's numerics: bf16 MXU operands, f32 accumulation, f32 bias/ReLU.
    def conv(x, w, b):
        y = jax.lax.conv_general_dilated(
            x.astype(jnp.bfloat16), w.astype(jnp.bfloat16),
            window_strides=(1, 1), padding="SAME",
            dimension_numbers=("NCHW", "OIHW", "NCHW"),
            preferred_element_type=jnp.float32)
        return jax.nn.relu(y + b[None, :, None, None])
    return conv(conv(x_nchw, w1_oihw, b1), w2_oihw, b2)


if __name__ == "__main__":
    key = jax.random.PRNGKey(0)
    k_x, k_w1, k_b1, k_w2, k_b2 = jax.random.split(key, 5)

    in_channels, out_channels = 4, 8
    N, H, W = 4, 16, 16

    x = jax.random.normal(k_x, (N, in_channels, H, W), dtype=jnp.float32)

    # Deterministic synthetic parameters (PyTorch-like uniform fan-in init).
    fan1 = in_channels * 9
    w1 = jax.random.uniform(k_w1, (out_channels, in_channels, 3, 3),
                            minval=-1.0, maxval=1.0, dtype=jnp.float32) / jnp.sqrt(fan1)
    b1 = jax.random.uniform(k_b1, (out_channels,),
                            minval=-1.0, maxval=1.0, dtype=jnp.float32) / jnp.sqrt(fan1)
    fan2 = out_channels * 9
    w2 = jax.random.uniform(k_w2, (out_channels, out_channels, 3, 3),
                            minval=-1.0, maxval=1.0, dtype=jnp.float32) / jnp.sqrt(fan2)
    b2 = jax.random.uniform(k_b2, (out_channels,),
                            minval=-1.0, maxval=1.0, dtype=jnp.float32) / jnp.sqrt(fan2)

    fwd = jax.jit(double_conv_forward)
    out = jax.block_until_ready(fwd(x, w1, b1, w2, b2))

    ref = jax.block_until_ready(_reference_double_conv_bf16(x, w1, b1, w2, b2))
    assert out.shape == (N, out_channels, H, W), out.shape
    err = float(jnp.max(jnp.abs(out - ref)))
    assert jnp.allclose(out, ref, rtol=5e-3, atol=5e-3), f"mismatch vs reference conv, max|d|={err}"

    print("KERNEL_OK")
</pallas_src>

<mosaic_0001>
module attributes {stable_mosaic.version = 11 : i64} {
  func.func @_double_conv_kernel(%arg0: i32, %arg1: memref<2x16x512xbf16, #tpu.memory_space<vmem>>, %arg2: memref<16x144xbf16, #tpu.memory_space<vmem>>, %arg3: memref<16x1xf32, #tpu.memory_space<vmem>>, %arg4: memref<8x144xbf16, #tpu.memory_space<vmem>>, %arg5: memref<8x1xf32, #tpu.memory_space<vmem>>, %arg6: memref<2x8x256xf32, #tpu.memory_space<vmem>>, %arg7: memref<144x512xbf16, #tpu.memory_space<vmem>>, %arg8: memref<2x16x512xbf16, #tpu.memory_space<vmem>>, %arg9: memref<144x512xbf16, #tpu.memory_space<vmem>>) attributes {dimension_semantics = [#tpu.dimension_semantics<parallel>], iteration_bounds = array<i64: 2>, scalar_prefetch = 0 : i64, scratch_operands = 3 : i64, tpu.core_type = #tpu.core_type<tc>, window_params = [{transform_indices = @transform_0, window_bounds = array<i64: 2, 16, 512>}, {pipeline_mode = #tpu.pipeline_mode<synchronous>, transform_indices = @transform_1, window_bounds = array<i64: 16, 144>}, {pipeline_mode = #tpu.pipeline_mode<synchronous>, transform_indices = @transform_2, window_bounds = array<i64: 16, 1>}, {pipeline_mode = #tpu.pipeline_mode<synchronous>, transform_indices = @transform_3, window_bounds = array<i64: 8, 144>}, {pipeline_mode = #tpu.pipeline_mode<synchronous>, transform_indices = @transform_4, window_bounds = array<i64: 8, 1>}, {transform_indices = @transform_5, window_bounds = array<i64: 2, 8, 256>}]} {
    %0 = tpu.iota {dimensions = array<i32: 1>} : vector<1x256xi32>
    %c16_i32 = arith.constant 16 : i32
    %c0_i32 = arith.constant 0 : i32
    %1 = arith.cmpi eq, %c16_i32, %c0_i32 : i32
    %c1_i32 = arith.constant 1 : i32
    %2 = arith.select %1, %c1_i32, %c16_i32 : i32
    %3 = vector.broadcast %2 : i32 to vector<1x256xi32>
    %4 = arith.remsi %0, %3 : vector<1x256xi32>
    %c0_i32_0 = arith.constant 0 : i32
    %5 = vector.broadcast %c0_i32_0 : i32 to vector<1x256xi32>
    %6 = arith.cmpi ne, %4, %5 : vector<1x256xi32>
    %c0_i32_1 = arith.constant 0 : i32
    %7 = vector.broadcast %c0_i32_1 : i32 to vector<1x256xi32>
    %8 = arith.cmpi slt, %4, %7 : vector<1x256xi32>
    %c0_i32_2 = arith.constant 0 : i32
    %9 = arith.cmpi slt, %2, %c0_i32_2 : i32
    %10 = vector.broadcast %9 : i1 to vector<1x256xi1>
    %11 = vector.broadcast %10 : vector<1x256xi1> to vector<1x256xi1>
    %12 = arith.xori %8, %11 : vector<1x256xi1>
    %13 = arith.andi %12, %6 : vector<1x256xi1>
    %14 = vector.broadcast %2 : i32 to vector<1x256xi32>
    %15 = arith.addi %4, %14 : vector<1x256xi32>
    %16 = arith.select %13, %15, %4 : vector<1x256xi1>, vector<1x256xi32>
    %c0_i32_3 = arith.constant 0 : i32
    %17 = vector.broadcast %c0_i32_3 : i32 to vector<1x256xi32>
    %18 = arith.cmpi ne, %16, %17 : vector<1x256xi32>
    %c15_i32 = arith.constant 15 : i32
    %19 = vector.broadcast %c15_i32 : i32 to vector<1x256xi32>
    %20 = arith.cmpi ne, %16, %19 : vector<1x256xi32>
    %c0 = arith.constant 0 : index
    %c0_4 = arith.constant 0 : index
    %c111 = arith.constant 111 : index
    %21 = vector.load %arg1[%c0, %c0_4, %c111] : memref<2x16x512xbf16, #tpu.memory_space<vmem>>, vector<1x16x256xbf16>
    %22 = vector.shape_cast %21 : vector<1x16x256xbf16> to vector<16x256xbf16>
    %cst = arith.constant 0.000000e+00 : bf16
    %23 = vector.broadcast %cst : bf16 to vector<16x256xbf16>
    %24 = vector.shape_cast %18 : vector<1x256xi1> to vector<1x256xi1>
    %25 = vector.broadcast %24 : vector<1x256xi1> to vector<16x256xi1>
    %26 = arith.select %25, %22, %23 : vector<16x256xi1>, vector<16x256xbf16>
    %c0_5 = arith.constant 0 : index
    %c0_6 = arith.constant 0 : index
    %27 = vector.load %arg7[%c0_5, %c0_6] : memref<144x512xbf16, #tpu.memory_space<vmem>>, vector<16x256xbf16>
    tpu.vector_store %arg7[%c0_5, %c0_6], %26 {strides = array<i32>} : memref<144x512xbf16, #tpu.memory_space<vmem>>, vector<16x256xbf16>,
    %c0_7 = arith.constant 0 : index
    %c0_8 = arith.constant 0 : index
    %c112 = arith.constant 112 : index
    %28 = vector.load %arg1[%c0_7, %c0_8, %c112] : memref<2x16x512xbf16, #tpu.memory_space<vmem>>, vector<1x16x256xbf16>
    %29 = vector.shape_cast %28 : vector<1x16x256xbf16> to vector<16x256xbf16>
    %c16 = arith.constant 16 : index
    %c0_9 = arith.constant 0 : index
    %30 = vector.load %arg7[%c16, %c0_9] : memref<144x512xbf16, #tpu.memory_space<vmem>>, vector<16x256xbf16>
    tpu.vector_store %arg7[%c16, %c0_9], %29 {strides = array<i32>} : memref<144x512xbf16, #tpu.memory_space<vmem>>, vector<16x256xbf16>,
    %c0_10 = arith.constant 0 : index
    %c0_11 = arith.constant 0 : index
    %c113 = arith.constant 113 : index
    %31 = vector.load %arg1[%c0_10, %c0_11, %c113] : memref<2x16x512xbf16, #tpu.memory_space<vmem>>, vector<1x16x256xbf16>
    %32 = vector.shape_cast %31 : vector<1x16x256xbf16> to vector<16x256xbf16>
    %cst_12 = arith.constant 0.000000e+00 : bf16
    %33 = vector.broadcast %cst_12 : bf16 to vector<16x256xbf16>
    %34 = vector.shape_cast %20 : vector<1x256xi1> to vector<1x256xi1>
    %35 = vector.broadcast %34 : vector<1x256xi1> to vector<16x256xi1>
    %36 = arith.select %35, %32, %33 : vector<16x256xi1>, vector<16x256xbf16>
    %c32 = arith.constant 32 : index
    %c0_13 = arith.constant 0 : index
    %37 = vector.load %arg7[%c32, %c0_13] : memref<144x512xbf16, #tpu.memory_space<vmem>>, vector<16x256xbf16>
    tpu.vector_store %arg7[%c32, %c0_13], %36 {strides = array<i32>} : memref<144x512xbf16, #tpu.memory_space<vmem>>, vector<16x256xbf16>,
    %c0_14 = arith.constant 0 : index
    %c0_15 = arith.constant 0 : index
    %c127 = arith.constant 127 : index
    %38 = vector.load %arg1[%c0_14, %c0_15, %c127] : memref<2x16x512xbf16, #tpu.memory_space<vmem>>, vector<1x16x256xbf16>
    %39 = vector.shape_cast %38 : vector<1x16x256xbf16> to vector<16x256xbf16>
    %cst_16 = arith.constant 0.000000e+00 : bf16
    %40 = vector.broadcast %cst_16 : bf16 to vector<16x256xbf16>
    %41 = vector.shape_cast %18 : vector<1x256xi1> to vector<1x256xi1>
    %42 = vector.broadcast %41 : vector<1x256xi1> to vector<16x256xi1>
    %43 = arith.select %42, %39, %40 : vector<16x256xi1>, vector<16x256xbf16>
    %c48 = arith.constant 48 : index
    %c0_17 = arith.constant 0 : index
    %44 = vector.load %arg7[%c48, %c0_17] : memref<144x512xbf16, #tpu.memory_space<vmem>>, vector<16x256xbf16>
    tpu.vector_store %arg7[%c48, %c0_17], %43 {strides = array<i32>} : memref<144x512xbf16, #tpu.memory_space<vmem>>, vector<16x256xbf16>,
    %c0_18 = arith.constant 0 : index
    %c0_19 = arith.constant 0 : index
    %c128 = arith.constant 128 : index
    %45 = vector.load %arg1[%c0_18, %c0_19, %c128] : memref<2x16x512xbf16, #tpu.memory_space<vmem>>, vector<1x16x256xbf16>
    %46 = vector.shape_cast %45 : vector<1x16x256xbf16> to vector<16x256xbf16>
    %c64 = arith.constant 64 : index
    %c0_20 = arith.constant 0 : index
    %47 = vector.load %arg7[%c64, %c0_20] : memref<144x512xbf16, #tpu.memory_space<vmem>>, vector<16x256xbf16>
    tpu.vector_store %arg7[%c64, %c0_20], %46 {strides = array<i32>} : memref<144x512xbf16, #tpu.memory_space<vmem>>, vector<16x256xbf16>,
    %c0_21 = arith.constant 0 : index
    %c0_22 = arith.constant 0 : index
    %c129 = arith.constant 129 : index
    %48 = vector.load %arg1[%c0_21, %c0_22, %c129] : memref<2x16x512xbf16, #tpu.memory_space<vmem>>, vector<1x16x256xbf16>
    %49 = vector.shape_cast %48 : vector<1x16x256xbf16> to vector<16x256xbf16>
    %cst_23 = arith.constant 0.000000e+00 : bf16
    %50 = vector.broadcast %cst_23 : bf16 to vector<16x256xbf16>
    %51 = vector.shape_cast %20 : vector<1x256xi1> to vector<1x256xi1>
    %52 = vector.broadcast %51 : vector<1x256xi1> to vector<16x256xi1>
    %53 = arith.select %52, %49, %50 : vector<16x256xi1>, vector<16x256xbf16>
    %c80 = arith.constant 80 : index
    %c0_24 = arith.constant 0 : index
    %54 = vector.load %arg7[%c80, %c0_24] : memref<144x512xbf16, #tpu.memory_space<vmem>>, vector<16x256xbf16>
    tpu.vector_store %arg7[%c80, %c0_24], %53 {strides = array<i32>} : memref<144x512xbf16, #tpu.memory_space<vmem>>, vector<16x256xbf16>,
    %c0_25 = arith.constant 0 : index
    %c0_26 = arith.constant 0 : index
    %c143 = arith.constant 143 : index
    %55 = vector.load %arg1[%c0_25, %c0_26, %c143] : memref<2x16x512xbf16, #tpu.memory_space<vmem>>, vector<1x16x256xbf16>
    %56 = vector.shape_cast %55 : vector<1x16x256xbf16> to vector<16x256xbf16>
    %cst_27 = arith.constant 0.000000e+00 : bf16
    %57 = vector.broadcast %cst_27 : bf16 to vector<16x256xbf16>
    %58 = vector.shape_cast %18 : vector<1x256xi1> to vector<1x256xi1>
    %59 = vector.broadcast %58 : vector<1x256xi1> to vector<16x256xi1>
    %60 = arith.select %59, %56, %57 : vector<16x256xi1>, vector<16x256xbf16>
    %c96 = arith.constant 96 : index
    %c0_28 = arith.constant 0 : index
    %61 = vector.load %arg7[%c96, %c0_28] : memref<144x512xbf16, #tpu.memory_space<vmem>>, vector<16x256xbf16>
    tpu.vector_store %arg7[%c96, %c0_28], %60 {strides = array<i32>} : memref<144x512xbf16, #tpu.memory_space<vmem>>, vector<16x256xbf16>,
    %c0_29 = arith.constant 0 : index
    %c0_30 = arith.constant 0 : index
    %c144 = arith.constant 144 : index
    %62 = vector.load %arg1[%c0_29, %c0_30, %c144] : memref<2x16x512xbf16, #tpu.memory_space<vmem>>, vector<1x16x256xbf16>
    %63 = vector.shape_cast %62 : vector<1x16x256xbf16> to vector<16x256xbf16>
    %c112_31 = arith.constant 112 : index
    %c0_32 = arith.constant 0 : index
    %64 = vector.load %arg7[%c112_31, %c0_32] : memref<144x512xbf16, #tpu.memory_space<vmem>>, vector<16x256xbf16>
    tpu.vector_store %arg7[%c112_31, %c0_32], %63 {strides = array<i32>} : memref<144x512xbf16, #tpu.memory_space<vmem>>, vector<16x256xbf16>,
    %c0_33 = arith.constant 0 : index
    %c0_34 = arith.constant 0 : index
    %c145 = arith.constant 145 : index
    %65 = vector.load %arg1[%c0_33, %c0_34, %c145] : memref<2x16x512xbf16, #tpu.memory_space<vmem>>, vector<1x16x256xbf16>
    %66 = vector.shape_cast %65 : vector<1x16x256xbf16> to vector<16x256xbf16>
    %cst_35 = arith.constant 0.000000e+00 : bf16
    %67 = vector.broadcast %cst_35 : bf16 to vector<16x256xbf16>
    %68 = vector.shape_cast %20 : vector<1x256xi1> to vector<1x256xi1>
    %69 = vector.broadcast %68 : vector<1x256xi1> to vector<16x256xi1>
    %70 = arith.select %69, %66, %67 : vector<16x256xi1>, vector<16x256xbf16>
    %c128_36 = arith.constant 128 : index
    %c0_37 = arith.constant 0 : index
    %71 = vector.load %arg7[%c128_36, %c0_37] : memref<144x512xbf16, #tpu.memory_space<vmem>>, vector<16x256xbf16>
    tpu.vector_store %arg7[%c128_36, %c0_37], %70 {strides = array<i32>} : memref<144x512xbf16, #tpu.memory_space<vmem>>, vector<16x256xbf16>,
    %c1 = arith.constant 1 : index
    %c0_38 = arith.constant 0 : index
    %c111_39 = arith.constant 111 : index
    %72 = vector.load %arg1[%c1, %c0_38, %c111_39] : memref<2x16x512xbf16, #tpu.memory_space<vmem>>, vector<1x16x256xbf16>
    %73 = vector.shape_cast %72 : vector<1x16x256xbf16> to vector<16x256xbf16>
    %cst_40 = arith.constant 0.000000e+00 : bf16
    %74 = vector.broadcast %cst_40 : bf16 to vector<16x256xbf16>
    %75 = vector.shape_cast %18 : vector<1x256xi1> to vector<1x256xi1>
    %76 = vector.broadcast %75 : vector<1x256xi1> to vector<16x256xi1>
    %77 = arith.select %76, %73, %74 : vector<16x256xi1>, vector<16x256xbf16>
    %c0_41 = arith.constant 0 : index
    %c256 = arith.constant 256 : index
    %78 = vector.load %arg7[%c0_41, %c256] : memref<144x512xbf16, #tpu.memory_space<vmem>>, vector<16x256xbf16>
    tpu.vector_store %arg7[%c0_41, %c256], %77 {strides = array<i32>} : memref<144x512xbf16, #tpu.memory_space<vmem>>, vector<16x256xbf16>,
    %c1_42 = arith.constant 1 : index
    %c0_43 = arith.constant 0 : index
    %c112_44 = arith.constant 112 : index
    %79 = vector.load %arg1[%c1_42, %c0_43, %c112_44] : memref<2x16x512xbf16, #tpu.memory_space<vmem>>, vector<1x16x256xbf16>
    %80 = vector.shape_cast %79 : vector<1x16x256xbf16> to vector<16x256xbf16>
    %c16_45 = arith.constant 16 : index
    %c256_46 = arith.constant 256 : index
    %81 = vector.load %arg7[%c16_45, %c256_46] : memref<144x512xbf16, #tpu.memory_space<vmem>>, vector<16x256xbf16>
    tpu.vector_store %arg7[%c16_45, %c256_46], %80 {strides = array<i32>} : memref<144x512xbf16, #tpu.memory_space<vmem>>, vector<16x256xbf16>,
    %c1_47 = arith.constant 1 : index
    %c0_48 = arith.constant 0 : index
    %c113_49 = arith.constant 113 : index
    %82 = vector.load %arg1[%c1_47, %c0_48, %c113_49] : memref<2x16x512xbf16, #tpu.memory_space<vmem>>, vector<1x16x256xbf16>
    %83 = vector.shape_cast %82 : vector<1x16x256xbf16> to vector<16x256xbf16>
    %cst_50 = arith.constant 0.000000e+00 : bf16
    %84 = vector.broadcast %cst_50 : bf16 to vector<16x256xbf16>
    %85 = vector.shape_cast %20 : vector<1x256xi1> to vector<1x256xi1>
    %86 = vector.broadcast %85 : vector<1x256xi1> to vector<16x256xi1>
    %87 = arith.select %86, %83, %84 : vector<16x256xi1>, vector<16x256xbf16>
    %c32_51 = arith.constant 32 : index
    %c256_52 = arith.constant 256 : index
    %88 = vector.load %arg7[%c32_51, %c256_52] : memref<144x512xbf16, #tpu.memory_space<vmem>>, vector<16x256xbf16>
    tpu.vector_store %arg7[%c32_51, %c256_52], %87 {strides = array<i32>} : memref<144x512xbf16, #tpu.memory_space<vmem>>, vector<16x256xbf16>,
    %c1_53 = arith.constant 1 : index
    %c0_54 = arith.constant 0 : index
    %c127_55 = arith.constant 127 : index
    %89 = vector.load %arg1[%c1_53, %c0_54, %c127_55] : memref<2x16x512xbf16, #tpu.memory_space<vmem>>, vector<1x16x256xbf16>
    %90 = vector.shape_cast %89 : vector<1x16x256xbf16> to vector<16x256xbf16>
    %cst_56 = arith.constant 0.000000e+00 : bf16
    %91 = vector.broadcast %cst_56 : bf16 to vector<16x256xbf16>
    %92 = vector.shape_cast %18 : vector<1x256xi1> to vector<1x256xi1>
    %93 = vector.broadcast %92 : vector<1x256xi1> to vector<16x256xi1>
    %94 = arith.select %93, %90, %91 : vector<16x256xi1>, vector<16x256xbf16>
    %c48_57 = arith.constant 48 : index
    %c256_58 = arith.constant 256 : index
    %95 = vector.load %arg7[%c48_57, %c256_58] : memref<144x512xbf16, #tpu.memory_space<vmem>>, vector<16x256xbf16>
    tpu.vector_store %arg7[%c48_57, %c256_58], %94 {strides = array<i32>} : memref<144x512xbf16, #tpu.memory_space<vmem>>, vector<16x256xbf16>,
    %c1_59 = arith.constant 1 : index
    %c0_60 = arith.constant 0 : index
    %c128_61 = arith.constant 128 : index
    %96 = vector.load %arg1[%c1_59, %c0_60, %c128_61] : memref<2x16x512xbf16, #tpu.memory_space<vmem>>, vector<1x16x256xbf16>
    %97 = vector.shape_cast %96 : vector<1x16x256xbf16> to vector<16x256xbf16>
    %c64_62 = arith.constant 64 : index
    %c256_63 = arith.constant 256 : index
    %98 = vector.load %arg7[%c64_62, %c256_63] : memref<144x512xbf16, #tpu.memory_space<vmem>>, vector<16x256xbf16>
    tpu.vector_store %arg7[%c64_62, %c256_63], %97 {strides = array<i32>} : memref<144x512xbf16, #tpu.memory_space<vmem>>, vector<16x256xbf16>,
    %c1_64 = arith.constant 1 : index
    %c0_65 = arith.constant 0 : index
    %c129_66 = arith.constant 129 : index
    %99 = vector.load %arg1[%c1_64, %c0_65, %c129_66] : memref<2x16x512xbf16, #tpu.memory_space<vmem>>, vector<1x16x256xbf16>
    %100 = vector.shape_cast %99 : vector<1x16x256xbf16> to vector<16x256xbf16>
    %cst_67 = arith.constant 0.000000e+00 : bf16
    %101 = vector.broadcast %cst_67 : bf16 to vector<16x256xbf16>
    %102 = vector.shape_cast %20 : vector<1x256xi1> to vector<1x256xi1>
    %103 = vector.broadcast %102 : vector<1x256xi1> to vector<16x256xi1>
    %104 = arith.select %103, %100, %101 : vector<16x256xi1>, vector<16x256xbf16>
    %c80_68 = arith.constant 80 : index
    %c256_69 = arith.constant 256 : index
    %105 = vector.load %arg7[%c80_68, %c256_69] : memref<144x512xbf16, #tpu.memory_space<vmem>>, vector<16x256xbf16>
    tpu.vector_store %arg7[%c80_68, %c256_69], %104 {strides = array<i32>} : memref<144x512xbf16, #tpu.memory_space<vmem>>, vector<16x256xbf16>,
    %c1_70 = arith.constant 1 : index
    %c0_71 = arith.constant 0 : index
    %c143_72 = arith.constant 143 : index
    %106 = vector.load %arg1[%c1_70, %c0_71, %c143_72] : memref<2x16x512xbf16, #tpu.memory_space<vmem>>, vector<1x16x256xbf16>
    %107 = vector.shape_cast %106 : vector<1x16x256xbf16> to vector<16x256xbf16>
    %cst_73 = arith.constant 0.000000e+00 : bf16
    %108 = vector.broadcast %cst_73 : bf16 to vector<16x256xbf16>
    %109 = vector.shape_cast %18 : vector<1x256xi1> to vector<1x256xi1>
    %110 = vector.broadcast %109 : vector<1x256xi1> to vector<16x256xi1>
    %111 = arith.select %110, %107, %108 : vector<16x256xi1>, vector<16x256xbf16>
    %c96_74 = arith.constant 96 : index
    %c256_75 = arith.constant 256 : index
    %112 = vector.load %arg7[%c96_74, %c256_75] : memref<144x512xbf16, #tpu.memory_space<vmem>>, vector<16x256xbf16>
    tpu.vector_store %arg7[%c96_74, %c256_75], %111 {strides = array<i32>} : memref<144x512xbf16, #tpu.memory_space<vmem>>, vector<16x256xbf16>,
    %c1_76 = arith.constant 1 : index
    %c0_77 = arith.constant 0 : index
    %c144_78 = arith.constant 144 : index
    %113 = vector.load %arg1[%c1_76, %c0_77, %c144_78] : memref<2x16x512xbf16, #tpu.memory_space<vmem>>, vector<1x16x256xbf16>
    %114 = vector.shape_cast %113 : vector<1x16x256xbf16> to vector<16x256xbf16>
    %c112_79 = arith.constant 112 : index
    %c256_80 = arith.constant 256 : index
    %115 = vector.load %arg7[%c112_79, %c256_80] : memref<144x512xbf16, #tpu.memory_space<vmem>>, vector<16x256xbf16>
    tpu.vector_store %arg7[%c112_79, %c256_80], %114 {strides = array<i32>} : memref<144x512xbf16, #tpu.memory_space<vmem>>, vector<16x256xbf16>,
    %c1_81 = arith.constant 1 : index
    %c0_82 = arith.constant 0 : index
    %c145_83 = arith.constant 145 : index
    %116 = vector.load %arg1[%c1_81, %c0_82, %c145_83] : memref<2x16x512xbf16, #tpu.memory_space<vmem>>, vector<1x16x256xbf16>
    %117 = vector.shape_cast %116 : vector<1x16x256xbf16> to vector<16x256xbf16>
    %cst_84 = arith.constant 0.000000e+00 : bf16
    %118 = vector.broadcast %cst_84 : bf16 to vector<16x256xbf16>
    %119 = vector.shape_cast %20 : vector<1x256xi1> to vector<1x256xi1>
    %120 = vector.broadcast %119 : vector<1x256xi1> to vector<16x256xi1>
    %121 = arith.select %120, %117, %118 : vector<16x256xi1>, vector<16x256xbf16>
    %c128_85 = arith.constant 128 : index
    %c256_86 = arith.constant 256 : index
    %122 = vector.load %arg7[%c128_85, %c256_86] : memref<144x512xbf16, #tpu.memory_space<vmem>>, vector<16x256xbf16>
    tpu.vector_store %arg7[%c128_85, %c256_86], %121 {strides = array<i32>} : memref<144x512xbf16, #tpu.memory_space<vmem>>, vector<16x256xbf16>,
    %c0_87 = arith.constant 0 : index
    %c0_88 = arith.constant 0 : index
    %123 = vector.load %arg2[%c0_87, %c0_88] : memref<16x144xbf16, #tpu.memory_space<vmem>>, vector<16x144xbf16>
    %c0_89 = arith.constant 0 : index
    %c0_90 = arith.constant 0 : index
    %124 = vector.load %arg7[%c0_89, %c0_90] : memref<144x512xbf16, #tpu.memory_space<vmem>>, vector<144x512xbf16>
    %cst_91 = arith.constant dense<0.000000e+00> : vector<16x512xf32>
    %125 = tpu.matmul %123, %124, %cst_91 {dimension_numbers = #tpu.dot_dimension_numbers<[1], [0], [0], [1], [0, 0, 1, 1], [], []>} : vector<16x144xbf16>, vector<144x512xbf16>, vector<16x512xf32> -> vector<16x512xf32>
    %c0_92 = arith.constant 0 : index
    %c0_93 = arith.constant 0 : index
    %126 = vector.load %arg3[%c0_92, %c0_93] : memref<16x1xf32, #tpu.memory_space<vmem>>, vector<16x1xf32>
    %127 = vector.broadcast %126 : vector<16x1xf32> to vector<16x512xf32>
    %128 = arith.addf %125, %127 : vector<16x512xf32>
    %cst_94 = arith.constant 0.000000e+00 : f32
    %129 = vector.broadcast %cst_94 : f32 to vector<16x512xf32>
    %130 = arith.maximumf %128, %129 : vector<16x512xf32>
    %cst_95 = arith.constant 0.000000e+00 : bf16
    %131 = vector.broadcast %cst_95 : bf16 to vector<2x16x128xbf16>
    %c0_96 = arith.constant 0 : index
    %c0_97 = arith.constant 0 : index
    %c0_98 = arith.constant 0 : index
    %132 = vector.load %arg8[%c0_96, %c0_97, %c0_98] : memref<2x16x512xbf16, #tpu.memory_space<vmem>>, vector<2x16x128xbf16>
    tpu.vector_store %arg8[%c0_96, %c0_97, %c0_98], %131 {strides = array<i32>} : memref<2x16x512xbf16, #tpu.memory_space<vmem>>, vector<2x16x128xbf16>,
    %cst_99 = arith.constant 0.000000e+00 : bf16
    %133 = vector.broadcast %cst_99 : bf16 to vector<2x16x128xbf16>
    %c0_100 = arith.constant 0 : index
    %c0_101 = arith.constant 0 : index
    %c384 = arith.constant 384 : index
    %134 = vector.load %arg8[%c0_100, %c0_101, %c384] : memref<2x16x512xbf16, #tpu.memory_space<vmem>>, vector<2x16x128xbf16>
    tpu.vector_store %arg8[%c0_100, %c0_101, %c384], %133 {strides = array<i32>} : memref<2x16x512xbf16, #tpu.memory_space<vmem>>, vector<2x16x128xbf16>,
    %135 = vector.extract_strided_slice %130 {offsets = [0, 0], sizes = [16, 256], strides = [1, 1]} : vector<16x512xf32> to vector<16x256xf32>
    %136 = arith.truncf %135 : vector<16x256xf32> to vector<16x256xbf16>
    %c0_102 = arith.constant 0 : index
    %c0_103 = arith.constant 0 : index
    %c128_104 = arith.constant 128 : index
    %137 = vector.load %arg8[%c0_102, %c0_103, %c128_104] : memref<2x16x512xbf16, #tpu.memory_space<vmem>>, vector<1x16x256xbf16>
    %138 = vector.shape_cast %137 : vector<1x16x256xbf16> to vector<16x256xbf16>
    %139 = vector.shape_cast %136 : vector<16x256xbf16> to vector<1x16x256xbf16>
    tpu.vector_store %arg8[%c0_102, %c0_103, %c128_104], %139 {strides = array<i32>} : memref<2x16x512xbf16, #tpu.memory_space<vmem>>, vector<1x16x256xbf16>,
    %140 = vector.extract_strided_slice %130 {offsets = [0, 256], sizes = [16, 256], strides = [1, 1]} : vector<16x512xf32> to vector<16x256xf32>
    %141 = arith.truncf %140 : vector<16x256xf32> to vector<16x256xbf16>
    %c1_105 = arith.constant 1 : index
    %c0_106 = arith.constant 0 : index
    %c128_107 = arith.constant 128 : index
    %142 = vector.load %arg8[%c1_105, %c0_106, %c128_107] : memref<2x16x512xbf16, #tpu.memory_space<vmem>>, vector<1x16x256xbf16>
    %143 = vector.shape_cast %142 : vector<1x16x256xbf16> to vector<16x256xbf16>
    %144 = vector.shape_cast %141 : vector<16x256xbf16> to vector<1x16x256xbf16>
    tpu.vector_store %arg8[%c1_105, %c0_106, %c128_107], %144 {strides = array<i32>} : memref<2x16x512xbf16, #tpu.memory_space<vmem>>, vector<1x16x256xbf16>,
    %c0_108 = arith.constant 0 : index
    %c0_109 = arith.constant 0 : index
    %c111_110 = arith.constant 111 : index
    %145 = vector.load %arg8[%c0_108, %c0_109, %c111_110] : memref<2x16x512xbf16, #tpu.memory_space<vmem>>, vector<1x16x256xbf16>
    %146 = vector.shape_cast %145 : vector<1x16x256xbf16> to vector<16x256xbf16>
    %cst_111 = arith.constant 0.000000e+00 : bf16
    %147 = vector.broadcast %cst_111 : bf16 to vector<16x256xbf16>
    %148 = vector.shape_cast %18 : vector<1x256xi1> to vector<1x256xi1>
    %149 = vector.broadcast %148 : vector<1x256xi1> to vector<16x256xi1>
    %150 = arith.select %149, %146, %147 : vector<16x256xi1>, vector<16x256xbf16>
    %c0_112 = arith.constant 0 : index
    %c0_113 = arith.constant 0 : index
    %151 = vector.load %arg9[%c0_112, %c0_113] : memref<144x512xbf16, #tpu.memory_space<vmem>>, vector<16x256xbf16>
    tpu.vector_store %arg9[%c0_112, %c0_113], %150 {strides = array<i32>} : memref<144x512xbf16, #tpu.memory_space<vmem>>, vector<16x256xbf16>,
    %c0_114 = arith.constant 0 : index
    %c0_115 = arith.constant 0 : index
    %c112_116 = arith.constant 112 : index
    %152 = vector.load %arg8[%c0_114, %c0_115, %c112_116] : memref<2x16x512xbf16, #tpu.memory_space<vmem>>, vector<1x16x256xbf16>
    %153 = vector.shape_cast %152 : vector<1x16x256xbf16> to vector<16x256xbf16>
    %c16_117 = arith.constant 16 : index
    %c0_118 = arith.constant 0 : index
    %154 = vector.load %arg9[%c16_117, %c0_118] : memref<144x512xbf16, #tpu.memory_space<vmem>>, vector<16x256xbf16>
    tpu.vector_store %arg9[%c16_117, %c0_118], %153 {strides = array<i32>} : memref<144x512xbf16, #tpu.memory_space<vmem>>, vector<16x256xbf16>,
    %c0_119 = arith.constant 0 : index
    %c0_120 = arith.constant 0 : index
    %c113_121 = arith.constant 113 : index
    %155 = vector.load %arg8[%c0_119, %c0_120, %c113_121] : memref<2x16x512xbf16, #tpu.memory_space<vmem>>, vector<1x16x256xbf16>
    %156 = vector.shape_cast %155 : vector<1x16x256xbf16> to vector<16x256xbf16>
    %cst_122 = arith.constant 0.000000e+00 : bf16
    %157 = vector.broadcast %cst_122 : bf16 to vector<16x256xbf16>
    %158 = vector.shape_cast %20 : vector<1x256xi1> to vector<1x256xi1>
    %159 = vector.broadcast %158 : vector<1x256xi1> to vector<16x256xi1>
    %160 = arith.select %159, %156, %157 : vector<16x256xi1>, vector<16x256xbf16>
    %c32_123 = arith.constant 32 : index
    %c0_124 = arith.constant 0 : index
    %161 = vector.load %arg9[%c32_123, %c0_124] : memref<144x512xbf16, #tpu.memory_space<vmem>>, vector<16x256xbf16>
    tpu.vector_store %arg9[%c32_123, %c0_124], %160 {strides = array<i32>} : memref<144x512xbf16, #tpu.memory_space<vmem>>, vector<16x256xbf16>,
    %c0_125 = arith.constant 0 : index
    %c0_126 = arith.constant 0 : index
    %c127_127 = arith.constant 127 : index
    %162 = vector.load %arg8[%c0_125, %c0_126, %c127_127] : memref<2x16x512xbf16, #tpu.memory_space<vmem>>, vector<1x16x256xbf16>
    %163 = vector.shape_cast %162 : vector<1x16x256xbf16> to vector<16x256xbf16>
    %cst_128 = arith.constant 0.000000e+00 : bf16
    %164 = vector.broadcast %cst_128 : bf16 to vector<16x256xbf16>
    %165 = vector.shape_cast %18 : vector<1x256xi1> to vector<1x256xi1>
    %166 = vector.broadcast %165 : vector<1x256xi1> to vector<16x256xi1>
    %167 = arith.select %166, %163, %164 : vector<16x256xi1>, vector<16x256xbf16>
    %c48_129 = arith.constant 48 : index
    %c0_130 = arith.constant 0 : index
    %168 = vector.load %arg9[%c48_129, %c0_130] : memref<144x512xbf16, #tpu.memory_space<vmem>>, vector<16x256xbf16>
    tpu.vector_store %arg9[%c48_129, %c0_130], %167 {strides = array<i32>} : memref<144x512xbf16, #tpu.memory_space<vmem>>, vector<16x256xbf16>,
    %c0_131 = arith.constant 0 : index
    %c0_132 = arith.constant 0 : index
    %c128_133 = arith.constant 128 : index
    %169 = vector.load %arg8[%c0_131, %c0_132, %c128_133] : memref<2x16x512xbf16, #tpu.memory_space<vmem>>, vector<1x16x256xbf16>
    %170 = vector.shape_cast %169 : vector<1x16x256xbf16> to vector<16x256xbf16>
    %c64_134 = arith.constant 64 : index
    %c0_135 = arith.constant 0 : index
    %171 = vector.load %arg9[%c64_134, %c0_135] : memref<144x512xbf16, #tpu.memory_space<vmem>>, vector<16x256xbf16>
    tpu.vector_store %arg9[%c64_134, %c0_135], %170 {strides = array<i32>} : memref<144x512xbf16, #tpu.memory_space<vmem>>, vector<16x256xbf16>,
    %c0_136 = arith.constant 0 : index
    %c0_137 = arith.constant 0 : index
    %c129_138 = arith.constant 129 : index
    %172 = vector.load %arg8[%c0_136, %c0_137, %c129_138] : memref<2x16x512xbf16, #tpu.memory_space<vmem>>, vector<1x16x256xbf16>
    %173 = vector.shape_cast %172 : vector<1x16x256xbf16> to vector<16x256xbf16>
    %cst_139 = arith.constant 0.000000e+00 : bf16
    %174 = vector.broadcast %cst_139 : bf16 to vector<16x256xbf16>
    %175 = vector.shape_cast %20 : vector<1x256xi1> to vector<1x256xi1>
    %176 = vector.broadcast %175 : vector<1x256xi1> to vector<16x256xi1>
    %177 = arith.select %176, %173, %174 : vector<16x256xi1>, vector<16x256xbf16>
    %c80_140 = arith.constant 80 : index
    %c0_141 = arith.constant 0 : index
    %178 = vector.load %arg9[%c80_140, %c0_141] : memref<144x512xbf16, #tpu.memory_space<vmem>>, vector<16x256xbf16>
    tpu.vector_store %arg9[%c80_140, %c0_141], %177 {strides = array<i32>} : memref<144x512xbf16, #tpu.memory_space<vmem>>, vector<16x256xbf16>,
    %c0_142 = arith.constant 0 : index
    %c0_143 = arith.constant 0 : index
    %c143_144 = arith.constant 143 : index
    %179 = vector.load %arg8[%c0_142, %c0_143, %c143_144] : memref<2x16x512xbf16, #tpu.memory_space<vmem>>, vector<1x16x256xbf16>
    %180 = vector.shape_cast %179 : vector<1x16x256xbf16> to vector<16x256xbf16>
    %cst_145 = arith.constant 0.000000e+00 : bf16
    %181 = vector.broadcast %cst_145 : bf16 to vector<16x256xbf16>
    %182 = vector.shape_cast %18 : vector<1x256xi1> to vector<1x256xi1>
    %183 = vector.broadcast %182 : vector<1x256xi1> to vector<16x256xi1>
    %184 = arith.select %183, %180, %181 : vector<16x256xi1>, vector<16x256xbf16>
    %c96_146 = arith.constant 96 : index
    %c0_147 = arith.constant 0 : index
    %185 = vector.load %arg9[%c96_146, %c0_147] : memref<144x512xbf16, #tpu.memory_space<vmem>>, vector<16x256xbf16>
    tpu.vector_store %arg9[%c96_146, %c0_147], %184 {strides = array<i32>} : memref<144x512xbf16, #tpu.memory_space<vmem>>, vector<16x256xbf16>,
    %c0_148 = arith.constant 0 : index
    %c0_149 = arith.constant 0 : index
    %c144_150 = arith.constant 144 : index
    %186 = vector.load %arg8[%c0_148, %c0_149, %c144_150] : memref<2x16x512xbf16, #tpu.memory_space<vmem>>, vector<1x16x256xbf16>
    %187 = vector.shape_cast %186 : vector<1x16x256xbf16> to vector<16x256xbf16>
    %c112_151 = arith.constant 112 : index
    %c0_152 = arith.constant 0 : index
    %188 = vector.load %arg9[%c112_151, %c0_152] : memref<144x512xbf16, #tpu.memory_space<vmem>>, vector<16x256xbf16>
    tpu.vector_store %arg9[%c112_151, %c0_152], %187 {strides = array<i32>} : memref<144x512xbf16, #tpu.memory_space<vmem>>, vector<16x256xbf16>,
    %c0_153 = arith.constant 0 : index
    %c0_154 = arith.constant 0 : index
    %c145_155 = arith.constant 145 : index
    %189 = vector.load %arg8[%c0_153, %c0_154, %c145_155] : memref<2x16x512xbf16, #tpu.memory_space<vmem>>, vector<1x16x256xbf16>
    %190 = vector.shape_cast %189 : vector<1x16x256xbf16> to vector<16x256xbf16>
    %cst_156 = arith.constant 0.000000e+00 : bf16
    %191 = vector.broadcast %cst_156 : bf16 to vector<16x256xbf16>
    %192 = vector.shape_cast %20 : vector<1x256xi1> to vector<1x256xi1>
    %193 = vector.broadcast %192 : vector<1x256xi1> to vector<16x256xi1>
    %194 = arith.select %193, %190, %191 : vector<16x256xi1>, vector<16x256xbf16>
    %c128_157 = arith.constant 128 : index
    %c0_158 = arith.constant 0 : index
    %195 = vector.load %arg9[%c128_157, %c0_158] : memref<144x512xbf16, #tpu.memory_space<vmem>>, vector<16x256xbf16>
    tpu.vector_store %arg9[%c128_157, %c0_158], %194 {strides = array<i32>} : memref<144x512xbf16, #tpu.memory_space<vmem>>, vector<16x256xbf16>,
    %c1_159 = arith.constant 1 : index
    %c0_160 = arith.constant 0 : index
    %c111_161 = arith.constant 111 : index
    %196 = vector.load %arg8[%c1_159, %c0_160, %c111_161] : memref<2x16x512xbf16, #tpu.memory_space<vmem>>, vector<1x16x256xbf16>
    %197 = vector.shape_cast %196 : vector<1x16x256xbf16> to vector<16x256xbf16>
    %cst_162 = arith.constant 0.000000e+00 : bf16
    %198 = vector.broadcast %cst_162 : bf16 to vector<16x256xbf16>
    %199 = vector.shape_cast %18 : vector<1x256xi1> to vector<1x256xi1>
    %200 = vector.broadcast %199 : vector<1x256xi1> to vector<16x256xi1>
    %201 = arith.select %200, %197, %198 : vector<16x256xi1>, vector<16x256xbf16>
    %c0_163 = arith.constant 0 : index
    %c256_164 = arith.constant 256 : index
    %202 = vector.load %arg9[%c0_163, %c256_164] : memref<144x512xbf16, #tpu.memory_space<vmem>>, vector<16x256xbf16>
    tpu.vector_store %arg9[%c0_163, %c256_164], %201 {strides = array<i32>} : memref<144x512xbf16, #tpu.memory_space<vmem>>, vector<16x256xbf16>,
    %c1_165 = arith.constant 1 : index
    %c0_166 = arith.constant 0 : index
    %c112_167 = arith.constant 112 : index
    %203 = vector.load %arg8[%c1_165, %c0_166, %c112_167] : memref<2x16x512xbf16, #tpu.memory_space<vmem>>, vector<1x16x256xbf16>
    %204 = vector.shape_cast %203 : vector<1x16x256xbf16> to vector<16x256xbf16>
    %c16_168 = arith.constant 16 : index
    %c256_169 = arith.constant 256 : index
    %205 = vector.load %arg9[%c16_168, %c256_169] : memref<144x512xbf16, #tpu.memory_space<vmem>>, vector<16x256xbf16>
    tpu.vector_store %arg9[%c16_168, %c256_169], %204 {strides = array<i32>} : memref<144x512xbf16, #tpu.memory_space<vmem>>, vector<16x256xbf16>,
    %c1_170 = arith.constant 1 : index
    %c0_171 = arith.constant 0 : index
    %c113_172 = arith.constant 113 : index
    %206 = vector.load %arg8[%c1_170, %c0_171, %c113_172] : memref<2x16x512xbf16, #tpu.memory_space<vmem>>, vector<1x16x256xbf16>
    %207 = vector.shape_cast %206 : vector<1x16x256xbf16> to vector<16x256xbf16>
    %cst_173 = arith.constant 0.000000e+00 : bf16
    %208 = vector.broadcast %cst_173 : bf16 to vector<16x256xbf16>
    %209 = vector.shape_cast %20 : vector<1x256xi1> to vector<1x256xi1>
    %210 = vector.broadcast %209 : vector<1x256xi1> to vector<16x256xi1>
    %211 = arith.select %210, %207, %208 : vector<16x256xi1>, vector<16x256xbf16>
    %c32_174 = arith.constant 32 : index
    %c256_175 = arith.constant 256 : index
    %212 = vector.load %arg9[%c32_174, %c256_175] : memref<144x512xbf16, #tpu.memory_space<vmem>>, vector<16x256xbf16>
    tpu.vector_store %arg9[%c32_174, %c256_175], %211 {strides = array<i32>} : memref<144x512xbf16, #tpu.memory_space<vmem>>, vector<16x256xbf16>,
    %c1_176 = arith.constant 1 : index
    %c0_177 = arith.constant 0 : index
    %c127_178 = arith.constant 127 : index
    %213 = vector.load %arg8[%c1_176, %c0_177, %c127_178] : memref<2x16x512xbf16, #tpu.memory_space<vmem>>, vector<1x16x256xbf16>
    %214 = vector.shape_cast %213 : vector<1x16x256xbf16> to vector<16x256xbf16>
    %cst_179 = arith.constant 0.000000e+00 : bf16
    %215 = vector.broadcast %cst_179 : bf16 to vector<16x256xbf16>
    %216 = vector.shape_cast %18 : vector<1x256xi1> to vector<1x256xi1>
    %217 = vector.broadcast %216 : vector<1x256xi1> to vector<16x256xi1>
    %218 = arith.select %217, %214, %215 : vector<16x256xi1>, vector<16x256xbf16>
    %c48_180 = arith.constant 48 : index
    %c256_181 = arith.constant 256 : index
    %219 = vector.load %arg9[%c48_180, %c256_181] : memref<144x512xbf16, #tpu.memory_space<vmem>>, vector<16x256xbf16>
    tpu.vector_store %arg9[%c48_180, %c256_181], %218 {strides = array<i32>} : memref<144x512xbf16, #tpu.memory_space<vmem>>, vector<16x256xbf16>,
    %c1_182 = arith.constant 1 : index
    %c0_183 = arith.constant 0 : index
    %c128_184 = arith.constant 128 : index
    %220 = vector.load %arg8[%c1_182, %c0_183, %c128_184] : memref<2x16x512xbf16, #tpu.memory_space<vmem>>, vector<1x16x256xbf16>
    %221 = vector.shape_cast %220 : vector<1x16x256xbf16> to vector<16x256xbf16>
    %c64_185 = arith.constant 64 : index
    %c256_186 = arith.constant 256 : index
    %222 = vector.load %arg9[%c64_185, %c256_186] : memref<144x512xbf16, #tpu.memory_space<vmem>>, vector<16x256xbf16>
    tpu.vector_store %arg9[%c64_185, %c256_186], %221 {strides = array<i32>} : memref<144x512xbf16, #tpu.memory_space<vmem>>, vector<16x256xbf16>,
    %c1_187 = arith.constant 1 : index
    %c0_188 = arith.constant 0 : index
    %c129_189 = arith.constant 129 : index
    %223 = vector.load %arg8[%c1_187, %c0_188, %c129_189] : memref<2x16x512xbf16, #tpu.memory_space<vmem>>, vector<1x16x256xbf16>
    %224 = vector.shape_cast %223 : vector<1x16x256xbf16> to vector<16x256xbf16>
    %cst_190 = arith.constant 0.000000e+00 : bf16
    %225 = vector.broadcast %cst_190 : bf16 to vector<16x256xbf16>
    %226 = vector.shape_cast %20 : vector<1x256xi1> to vector<1x256xi1>
    %227 = vector.broadcast %226 : vector<1x256xi1> to vector<16x256xi1>
    %228 = arith.select %227, %224, %225 : vector<16x256xi1>, vector<16x256xbf16>
    %c80_191 = arith.constant 80 : index
    %c256_192 = arith.constant 256 : index
    %229 = vector.load %arg9[%c80_191, %c256_192] : memref<144x512xbf16, #tpu.memory_space<vmem>>, vector<16x256xbf16>
    tpu.vector_store %arg9[%c80_191, %c256_192], %228 {strides = array<i32>} : memref<144x512xbf16, #tpu.memory_space<vmem>>, vector<16x256xbf16>,
    %c1_193 = arith.constant 1 : index
    %c0_194 = arith.constant 0 : index
    %c143_195 = arith.constant 143 : index
    %230 = vector.load %arg8[%c1_193, %c0_194, %c143_195] : memref<2x16x512xbf16, #tpu.memory_space<vmem>>, vector<1x16x256xbf16>
    %231 = vector.shape_cast %230 : vector<1x16x256xbf16> to vector<16x256xbf16>
    %cst_196 = arith.constant 0.000000e+00 : bf16
    %232 = vector.broadcast %cst_196 : bf16 to vector<16x256xbf16>
    %233 = vector.shape_cast %18 : vector<1x256xi1> to vector<1x256xi1>
    %234 = vector.broadcast %233 : vector<1x256xi1> to vector<16x256xi1>
    %235 = arith.select %234, %231, %232 : vector<16x256xi1>, vector<16x256xbf16>
    %c96_197 = arith.constant 96 : index
    %c256_198 = arith.constant 256 : index
    %236 = vector.load %arg9[%c96_197, %c256_198] : memref<144x512xbf16, #tpu.memory_space<vmem>>, vector<16x256xbf16>
    tpu.vector_store %arg9[%c96_197, %c256_198], %235 {strides = array<i32>} : memref<144x512xbf16, #tpu.memory_space<vmem>>, vector<16x256xbf16>,
    %c1_199 = arith.constant 1 : index
    %c0_200 = arith.constant 0 : index
    %c144_201 = arith.constant 144 : index
    %237 = vector.load %arg8[%c1_199, %c0_200, %c144_201] : memref<2x16x512xbf16, #tpu.memory_space<vmem>>, vector<1x16x256xbf16>
    %238 = vector.shape_cast %237 : vector<1x16x256xbf16> to vector<16x256xbf16>
    %c112_202 = arith.constant 112 : index
    %c256_203 = arith.constant 256 : index
    %239 = vector.load %arg9[%c112_202, %c256_203] : memref<144x512xbf16, #tpu.memory_space<vmem>>, vector<16x256xbf16>
    tpu.vector_store %arg9[%c112_202, %c256_203], %238 {strides = array<i32>} : memref<144x512xbf16, #tpu.memory_space<vmem>>, vector<16x256xbf16>,
    %c1_204 = arith.constant 1 : index
    %c0_205 = arith.constant 0 : index
    %c145_206 = arith.constant 145 : index
    %240 = vector.load %arg8[%c1_204, %c0_205, %c145_206] : memref<2x16x512xbf16, #tpu.memory_space<vmem>>, vector<1x16x256xbf16>
    %241 = vector.shape_cast %240 : vector<1x16x256xbf16> to vector<16x256xbf16>
    %cst_207 = arith.constant 0.000000e+00 : bf16
    %242 = vector.broadcast %cst_207 : bf16 to vector<16x256xbf16>
    %243 = vector.shape_cast %20 : vector<1x256xi1> to vector<1x256xi1>
    %244 = vector.broadcast %243 : vector<1x256xi1> to vector<16x256xi1>
    %245 = arith.select %244, %241, %242 : vector<16x256xi1>, vector<16x256xbf16>
    %c128_208 = arith.constant 128 : index
    %c256_209 = arith.constant 256 : index
    %246 = vector.load %arg9[%c128_208, %c256_209] : memref<144x512xbf16, #tpu.memory_space<vmem>>, vector<16x256xbf16>
    tpu.vector_store %arg9[%c128_208, %c256_209], %245 {strides = array<i32>} : memref<144x512xbf16, #tpu.memory_space<vmem>>, vector<16x256xbf16>,
    %c0_210 = arith.constant 0 : index
    %c0_211 = arith.constant 0 : index
    %247 = vector.load %arg4[%c0_210, %c0_211] : memref<8x144xbf16, #tpu.memory_space<vmem>>, vector<8x144xbf16>
    %c0_212 = arith.constant 0 : index
    %c0_213 = arith.constant 0 : index
    %248 = vector.load %arg9[%c0_212, %c0_213] : memref<144x512xbf16, #tpu.memory_space<vmem>>, vector<144x512xbf16>
    %cst_214 = arith.constant dense<0.000000e+00> : vector<8x512xf32>
    %249 = tpu.matmul %247, %248, %cst_214 {dimension_numbers = #tpu.dot_dimension_numbers<[1], [0], [0], [1], [0, 0, 1, 1], [], []>} : vector<8x144xbf16>, vector<144x512xbf16>, vector<8x512xf32> -> vector<8x512xf32>
    %c0_215 = arith.constant 0 : index
    %c0_216 = arith.constant 0 : index
    %250 = vector.load %arg5[%c0_215, %c0_216] : memref<8x1xf32, #tpu.memory_space<vmem>>, vector<8x1xf32>
    %251 = vector.broadcast %250 : vector<8x1xf32> to vector<8x512xf32>
    %252 = arith.addf %249, %251 : vector<8x512xf32>
    %cst_217 = arith.constant 0.000000e+00 : f32
    %253 = vector.broadcast %cst_217 : f32 to vector<8x512xf32>
    %254 = arith.maximumf %252, %253 : vector<8x512xf32>
    %255 = vector.extract_strided_slice %254 {offsets = [0, 0], sizes = [8, 256], strides = [1, 1]} : vector<8x512xf32> to vector<8x256xf32>
    %c0_218 = arith.constant 0 : index
    %c0_219 = arith.constant 0 : index
    %c0_220 = arith.constant 0 : index
    %256 = vector.load %arg6[%c0_218, %c0_219, %c0_220] : memref<2x8x256xf32, #tpu.memory_space<vmem>>, vector<1x8x256xf32>
    %257 = vector.shape_cast %256 : vector<1x8x256xf32> to vector<8x256xf32>
    %258 = vector.shape_cast %255 : vector<8x256xf32> to vector<1x8x256xf32>
    tpu.vector_store %arg6[%c0_218, %c0_219, %c0_220], %258 {strides = array<i32>} : memref<2x8x256xf32, #tpu.memory_space<vmem>>, vector<1x8x256xf32>,
    %259 = vector.extract_strided_slice %254 {offsets = [0, 256], sizes = [8, 256], strides = [1, 1]} : vector<8x512xf32> to vector<8x256xf32>
    %c1_221 = arith.constant 1 : index
    %c0_222 = arith.constant 0 : index
    %c0_223 = arith.constant 0 : index
    %260 = vector.load %arg6[%c1_221, %c0_222, %c0_223] : memref<2x8x256xf32, #tpu.memory_space<vmem>>, vector<1x8x256xf32>
    %261 = vector.shape_cast %260 : vector<1x8x256xf32> to vector<8x256xf32>
    %262 = vector.shape_cast %259 : vector<8x256xf32> to vector<1x8x256xf32>
    tpu.vector_store %arg6[%c1_221, %c0_222, %c0_223], %262 {strides = array<i32>} : memref<2x8x256xf32, #tpu.memory_space<vmem>>, vector<1x8x256xf32>,
    return
  }
  func.func @transform_0(%arg0: i32) -> (i32, i32, i32) {
    %c0_i32 = arith.constant 0 : i32
    %c0_i32_0 = arith.constant 0 : i32
    %c0_i32_1 = arith.constant 0 : i32
    return %arg0, %c0_i32, %c0_i32_0 : i32, i32, i32
  }
  func.func @transform_1(%arg0: i32) -> (i32, i32) {
    %c0_i32 = arith.constant 0 : i32
    %c0_i32_0 = arith.constant 0 : i32
    %c0_i32_1 = arith.constant 0 : i32
    return %c0_i32, %c0_i32_0 : i32, i32
  }
  func.func @transform_2(%arg0: i32) -> (i32, i32) {
    %c0_i32 = arith.constant 0 : i32
    %c0_i32_0 = arith.constant 0 : i32
    %c0_i32_1 = arith.constant 0 : i32
    return %c0_i32, %c0_i32_0 : i32, i32
  }
  func.func @transform_3(%arg0: i32) -> (i32, i32) {
    %c0_i32 = arith.constant 0 : i32
    %c0_i32_0 = arith.constant 0 : i32
    %c0_i32_1 = arith.constant 0 : i32
    return %c0_i32, %c0_i32_0 : i32, i32
  }
  func.func @transform_4(%arg0: i32) -> (i32, i32) {
    %c0_i32 = arith.constant 0 : i32
    %c0_i32_0 = arith.constant 0 : i32
    %c0_i32_1 = arith.constant 0 : i32
    return %c0_i32, %c0_i32_0 : i32, i32
  }
  func.func @transform_5(%arg0: i32) -> (i32, i32, i32) {
    %c0_i32 = arith.constant 0 : i32
    %c0_i32_0 = arith.constant 0 : i32
    %c0_i32_1 = arith.constant 0 : i32
    return %arg0, %c0_i32, %c0_i32_0 : i32, i32, i32
  }
}

</mosaic_0001>

<bundles_post_ra>
// kernel: double_conv_forward.1
= control target key start
LH: loop header
LB: loop body
LE: loop exit
PB: predicated region body
PF: predicated region fallthrough
CT: control target
= control target key end

     0   :  { %s2346_s18 = smov 0   ;;  %s3172_s0 = inlined_call_operand.vmem [shape: bf16[4,16,512], index: 0, kind: input, shape index: {}]   ;;  %s3173_s1 = inlined_call_operand.vmem [shape: bf16[16,144], index: 1, kind: input, shape index: {}]   ;;  %s3174_s2 = inlined_call_operand.vmem [shape: f32[16,1], index: 2, kind: input, shape index: {}]   ;;  %s3175_s3 = inlined_call_operand.vmem [shape: bf16[8,144], index: 3, kind: input, shape index: {}]   ;;  %s3176_s4 = inlined_call_operand.vmem [shape: f32[8,1], index: 4, kind: input, shape index: {}]   ;;  %s3177_s5 = inlined_call_operand.vmem [shape: f32[4,8,256], index: 5, kind: output, shape index: {}]  }
   0x1 LB: > { %s2088_s19 = sadd.s32 4294967295, %s2305_s18   ;;  %p2092_p0 = scmp.ge.s32.totalorder %s2305_s18, 1  ;;  %s2305_s18 = sphi %s2346_s18, %s15_s18  }
   0x2   : > { %p189_p1 = scmp.lt.s32.totalorder %s2305_s18, 3 }
   0x4   : > { %p190_p2 = pnand %p2092_p0, %p189_p1 }
   0x5   : > { %s2093_s20 = sshll.u32 (!%p190_p2), %s2088_s19, 1  ;;  %s2308_s21 = smov (!%p190_p2), 15  }
   0x6   : > { %193 = sbr.rel (%p190_p2) target bundleno = 983 (0x3d7), region = 40  ;;  %p220_p3 = scmp.lt.s32.totalorder (!%p190_p2), %s2093_s20, 3 }
   0x7   : > { %s2309_s22 = smov (!%p190_p2), 127   ;;  %s2310_s24 = smov (!%p190_p2), 1  }
   0x8   : > { %s2311_s25 = smov (!%p190_p2), 113   ;;  %s2312_s29 = smov (!%p190_p2), 111  }
   0x9   : > { %s2313_s30 = smov (!%p190_p2), 17   ;;  %s2314_s6 = smov (!%p190_p2), 112  }
   0xa   : > { %s2315_s7 = smov (!%p190_p2), 16  }
   0xb   : > { %v236_v0 = vlaneseq  ;;  %v2307_v1 = vmov 0   ;;  %s3221_s20 = smov (!%p220_p3, %s2093_s20), 3  ;;  %vm381_vm6 = vcmask 121856   ;;  %vm421_vm9 = vcmask 7168  }
   0xc   : > { %1166 = vst [vmem:[#allocation3] sm:$0xf] %v2307_v1  ;;  %1167 = vst [vmem:[#allocation3 + $0x10] sm:$0xf] %v2307_v1  ;;  %2245 = vset.pattern.permute.xlu1 %v2307_v1  ;;  %2244 = vset.pattern.permute.xlu0 %v2307_v1  ;;  %s2221_s23 = sshll.u32 %s3221_s20, 5  ;;  %vm304_vm12 = vcmask 1043456  }
   0xd   : > { %1168 = vst [vmem:[#allocation3 + $0x20] sm:$0xf] %v2307_v1  ;;  %1169 = vst [vmem:[#allocation3 + $0x30] sm:$0xf] %v2307_v1  ;;  %v237_v2 = vand.u32 127, %v236_v0  ;;  %s2364_s28 = scalar_lea.vmem %s3172_s0, %s2221_s23  ;;  %vm3178_vm13 = vcmask 916480  }
   0xe   : > { %1170 = vst [vmem:[#allocation3 + $0xc] sm:$0xf] %v2307_v1  ;;  %1171 = vst [vmem:[#allocation3 + $0x1c] sm:$0xf] %v2307_v1  ;;  %v510_v8 = vld [vmem:[%s2364_s28 + $0xc] sm:$0xf] }
   0xf   : > { %1172 = vst [vmem:[#allocation3 + $0x2c] sm:$0xf] %v2307_v1  ;;  %1173 = vst [vmem:[#allocation3 + $0x3c] sm:$0xf] %v2307_v1  ;;  %v238_v3 = vadd.s32 128, %v237_v2  ;;  %v243_v4 = vand.u32 15, %v237_v2 }
  0x10   : > { %v2370_v9 = vld [vmem:[%s2364_s28 + $0x4] sm:$0xff]  ;;  %v512_v10 = vld [vmem:[%s2364_s28 + $0x1c] sm:$0xf]  ;;  %v2377_v11 = vld [vmem:[%s2364_s28 + $0x14] sm:$0xff]  ;;  %vm396_vm14 = vcmask 1039360  }
  0x11   : > { %v250_v5 = vand.u32 15, %v238_v3  ;;  %vm263_vm0 = vcmp.ne.s32.totalorder %v243_v4, 0  ;;  %vm265_vm1 = vcmp.ne.s32.totalorder %v243_v4, 15  ;;  %v2126_v12 = vld [vmem:[%s2364_s28 + $0x2c] sm:$0xf]  ;;  %v2384_v13 = vld [vmem:[%s2364_s28 + $0x24] sm:$0xff] }
  0x12   : > { %v2128_v14 = vld [vmem:[%s2364_s28 + $0x3c] sm:$0xf]  ;;  %v2391_v15 = vld [vmem:[%s2364_s28 + $0x34] sm:$0xff]  ;;  %v315_v16 = vld [vmem:[%s2364_s28 + $0x8] sm:$0xf] }
  0x13   : > { %vm264_vm2 = vcmp.ne.s32.totalorder %v250_v5, 0  ;;  %vm266_vm3 = vcmp.ne.s32.totalorder %v250_v5, 15  ;;  %v2398_v17 = vld [vmem:[%s2364_s28] sm:$0xff]  ;;  %v317_v18 = vld [vmem:[%s2364_s28 + $0x18] sm:$0xf]  ;;  %v2405_v19 = vld [vmem:[%s2364_s28 + $0x10] sm:$0xff] }
  0x14   : > { %vm275_vm4 = vmpackc.low %vm264_vm2, %vm263_vm0  ;;  %v2104_v20 = vld [vmem:[%s2364_s28 + $0x28] sm:$0xf]  ;;  %v2412_v21 = vld [vmem:[%s2364_s28 + $0x20] sm:$0xff] }
  0x15   : > { %v276_v6 = vsel %vm275_vm4, 65537, %v2307_v1  ;;  %vm351_vm5 = vmpackc.low %vm266_vm3, %vm265_vm1  ;;  %v2106_v22 = vld [vmem:[%s2364_s28 + $0x38] sm:$0xf]  ;;  %v2419_v23 = vld [vmem:[%s2364_s28 + $0x30] sm:$0xff]  ;;  %vm356_vm1 = vcmask 924672   ;;  %vm3183_vm4 = vcmask 908288  }
  0x16   : > { %475 = vrot.lane.b32.xlu0 %v276_v6, %s2308_s21  ;;  %393 = vrot.lane.b32.xlu1 %v276_v6, %s2309_s22  ;;  %v352_v7 = vsel %vm351_vm5, 65537, %v2307_v1  ;;  %v472_v27 = vld [vmem:[%s2364_s28 + $0xc] sm:$0xf]  ;;  %v474_v34 = vld [vmem:[%s2364_s28 + $0x1c] sm:$0xf] }
  0x17   : > { %v2122_v39 = vld [vmem:[%s2364_s28 + $0x2c] sm:$0xf]  ;;  %v2124_v45 = vld [vmem:[%s2364_s28 + $0x3c] sm:$0xf] }
  0x18   : > { %v434_v48 = vld [vmem:[%s2364_s28 + $0xc] sm:$0xf]  ;;  %v436_v62 = vld [vmem:[%s2364_s28 + $0x1c] sm:$0xf] }
  0x1a   : > { %437 = vrot.lane.b32.xlu0 %v352_v7, %s2310_s24  ;;  %353 = vrot.lane.b32.xlu1 %v352_v7, %s2311_s25 }
  0x1e   : > { %277 = vrot.lane.b32.xlu0 %v276_v6, %s2312_s29  ;;  %542 = vrot.lane.b32.xlu1 %v352_v7, %s2313_s30 }
  0x22   : > { %519 = vrot.lane.b32.xlu1 %v510_v8, %s2314_s6  ;;  %517 = vrot.lane.b32.xlu0 %v2370_v9, %s2314_s6 }
  0x26   : > { %523 = vrot.lane.b32.xlu1 %v512_v10, %s2314_s6  ;;  %521 = vrot.lane.b32.xlu0 %v2377_v11, %s2314_s6 }
  0x2a   : > { %779 = vrot.lane.b32.xlu1 %v2126_v12, %s2314_s6  ;;  %777 = vrot.lane.b32.xlu0 %v2384_v13, %s2314_s6 }
  0x2e   : > { %783 = vrot.lane.b32.xlu1 %v2128_v14, %s2314_s6  ;;  %781 = vrot.lane.b32.xlu0 %v2391_v15, %s2314_s6  ;;  %v2118_v14 = vld [vmem:[%s2364_s28 + $0x2c] sm:$0xf] }
  0x32   : > { %324 = vrot.lane.b32.xlu1 %v315_v16, %s2315_s7  ;;  %322 = vrot.lane.b32.xlu0 %v2398_v17, %s2315_s7 }
  0x36   : > { %328 = vrot.lane.b32.xlu1 %v317_v18, %s2315_s7  ;;  %326 = vrot.lane.b32.xlu0 %v2405_v19, %s2315_s7 }
  0x3a   : > { %619 = vrot.lane.b32.xlu1 %v2104_v20, %s2315_s7  ;;  %617 = vrot.lane.b32.xlu0 %v2412_v21, %s2315_s7 }
  0x3e   : > { %623 = vrot.lane.b32.xlu1 %v2106_v22, %s2315_s7  ;;  %621 = vrot.lane.b32.xlu0 %v2419_v23, %s2315_s7 }
  0x88   : > { %v476_v24 = vpop.permute.xlu0 %475  ;;  %v2424_v25 = vpop.permute.xlu1 %393 }
  0x89   : > { %v477_v26 = vrot.slane %v476_v24, 4  ;;  %v395_v22 = vrot.slane %v2424_v25, 4 }
  0x8b   : > { %v2428_v28 = vsel %vm381_vm6, %v477_v26, %v476_v24  ;;  %vm2430_vm7 = vcmp.ne.s16.totalorder %v477_v26, 0  ;;  %vm2518_vm15 = vcmp.ne.s16.totalorder %v395_v22, 0 }
  0x8c   : > { %vm479_vm8 = vcmp.ne.s16.totalorder %v2428_v28, 0  ;;  %v482_v30 = vsel %vm2430_vm7, %v472_v27, 0  ;;  %v438_v31 = vpop.permute.xlu0 %437  ;;  %v2437_v32 = vpop.permute.xlu1 %353  ;;  %v484_v35 = vsel %vm2430_vm7, %v474_v34, 0  ;;  %v742_v41 = vsel %vm2430_vm7, %v2122_v39, 0  ;;  %v390_v39 = vld [vmem:[%s2364_s28 + $0x8] sm:$0xf] }
  0x8d   : > { %491 = vrot.lane.b32.xlu1 %v482_v30, %s2311_s25  ;;  %v481_v33 = vsel %vm479_vm8, %v2370_v9, 0  ;;  %v483_v38 = vsel %vm479_vm8, %v2377_v11, 0  ;;  %v439_v40 = vrot.slane %v438_v31, 4  ;;  %v741_v44 = vsel %vm479_vm8, %v2384_v13, 0 }
  0x8e   : > { %489 = vrot.lane.b32.xlu0 %v481_v33, %s2311_s25  ;;  %v744_v49 = vsel %vm2430_vm7, %v2124_v45, 0  ;;  %v743_v52 = vsel %vm479_vm8, %v2391_v15, 0 }
  0x8f   : > { %v2465_v46 = vsel %vm421_vm9, %v439_v40, %v438_v31  ;;  %vm2468_vm10 = vcmp.ne.s16.totalorder %v439_v40, 0  ;;  %v2120_v31 = vld [vmem:[%s2364_s28 + $0x3c] sm:$0xf] }
  0x90   : > { %v2447_v36 = vpop.permute.xlu0 %277  ;;  %v2449_v37 = vpop.permute.xlu1 %542  ;;  %vm3181_vm11 = vcmp.ne.s16.totalorder %v2465_v46, 0  ;;  %v444_v53 = vsel %vm2468_vm10, %v434_v48, 0  ;;  %v446_v7 = vsel %vm2468_vm10, %v436_v62, 0  ;;  %v710_v26 = vsel %vm2468_vm10, %v2118_v14, 0  ;;  %v2112_v48 = vld [vmem:[%s2364_s28 + $0x28] sm:$0xf] }
  0x91   : > { %495 = vrot.lane.b32.xlu1 %v484_v35, %s2311_s25  ;;  %v443_v58 = vsel %vm3181_vm11, %v2370_v9, 0  ;;  %v445_v12 = vsel %vm3181_vm11, %v2377_v11, 0  ;;  %v709_v30 = vsel %vm3181_vm11, %v2384_v13, 0  ;;  %v2516_v35 = vsel %vm396_vm14, %v395_v22, %v2424_v25  ;;  %v2108_v62 = vld [vmem:[%s2364_s28 + $0x28] sm:$0xf] }
  0x92   : > { %493 = vrot.lane.b32.xlu0 %v483_v38, %s2311_s25  ;;  %v712_v40 = vsel %vm2468_vm10, %v2120_v31, 0  ;;  %vm3180_vm0 = vcmp.ne.s16.totalorder %v2516_v35, 0  ;;  %v401_v25 = vsel %vm2518_vm15, %v390_v39, 0  ;;  %v2102_v22 = vld [vmem:[%s2364_s28 + $0x38] sm:$0xf] }
  0x93   : > { %v402_v45 = vsel %vm3180_vm0, %v2405_v19, 0  ;;  %v541_v31 = vld [vmem:[%s2364_s28 + $0x1c] sm:$0xf]  ;;  %v2292_v39 = vld [vmem:[%s3173_s1 + $0x4] ss:$8 sps:$4 sm:$0xff]  }
  0x94   : > { %v520_v42 = vpop.permute.xlu1 %519  ;;  %v518_v43 = vpop.permute.xlu0 %517 }
  0x95   : > { %751 = vrot.lane.b32.xlu1 %v742_v41, %s2311_s25  ;;  %v526_v54 = vrot.slane %v520_v42, 4  ;;  %v525_v55 = vrot.slane %v518_v43, 4  ;;  %v711_v41 = vsel %vm3181_vm11, %v2391_v15, 0  ;;  %v400_v42 = vsel %vm3180_vm0, %v2398_v17, 0 }
  0x96   : > { %749 = vrot.lane.b32.xlu0 %v741_v44, %s2311_s25 }
  0x97   : > { %v529_v61 = vsel %vm304_vm12, %v525_v55, %v526_v54  ;;  %v344_v55 = vld [vmem:[%s2364_s28 + $0x8] sm:$0xf] }
  0x98   : > { %v524_v50 = vpop.permute.xlu1 %523  ;;  %v522_v51 = vpop.permute.xlu0 %521  ;;  %v531_v1 = vsel %vm3178_vm13, %v518_v43, %v529_v61  ;;  %v392_v43 = vld [vmem:[%s2364_s28 + $0x18] sm:$0xf] }
  0x99   : > { %755 = vrot.lane.b32.xlu1 %v744_v49, %s2311_s25  ;;  %v528_v56 = vrot.slane %v524_v50, 4  ;;  %v527_v57 = vrot.slane %v522_v51, 4  ;;  %v403_v44 = vsel %vm2518_vm15, %v392_v43, 0  ;;  %v355_v49 = vrot.slane %v2437_v32, 4 }
  0x9a   : > { %753 = vrot.lane.b32.xlu0 %v743_v52, %s2311_s25  ;;  %v674_v50 = vsel %vm2518_vm15, %v2112_v48, 0  ;;  %v2114_v52 = vld [vmem:[%s2364_s28 + $0x38] sm:$0xf]  ;;  %v868_v48 = vld [vmem:[%s3174_s2 + $0x8] sm:$0xff] }
  0x9b   : > { %v532_v2 = vsel %vm304_vm12, %v527_v57, %v528_v56  ;;  %vm2560_vm2 = vcmp.ne.s16.totalorder %v355_v49, 0  ;;  %v676_v56 = vsel %vm2518_vm15, %v2114_v52, 0  ;;  %v675_v57 = vsel %vm3180_vm0, %v2419_v23, 0  ;;  %v1396_v52 = vld [vmem:[#allocation3 + $0xc] sm:$0xf] }
  0x9c   : > { %v780_v59 = vpop.permute.xlu1 %779  ;;  %v778_v60 = vpop.permute.xlu0 %777  ;;  %v533_v3 = vsel %vm3178_vm13, %v522_v51, %v532_v2  ;;  %v673_v51 = vsel %vm3180_vm0, %v2412_v21, 0  ;;  %v2110_v2 = vld [vmem:[%s2364_s28 + $0x38] sm:$0xf] }
  0x9d   : > { %453 = vrot.lane.b32.xlu1 %v444_v53, %s2309_s22  ;;  %v786_v63 = vrot.slane %v780_v59, 4  ;;  %v785_v0 = vrot.slane %v778_v60, 4  ;;  %v2164_v4 = vcombine.high %v531_v1, %v533_v3  ;;  %v2163_v5 = vcombine.low %v531_v1, %v533_v3  ;;  %v346_v59 = vld [vmem:[%s2364_s28 + $0x18] sm:$0xf] }
  0x9e   : > { %451 = vrot.lane.b32.xlu0 %v443_v58, %s2309_s22  ;;  %v2558_v53 = vsel %vm356_vm1, %v355_v49, %v2437_v32  ;;  %v361_v32 = vsel %vm2560_vm2, %v344_v55, 0  ;;  %v1648_v49 = vld [vmem:[#allocation3 + $0x2c] sm:$0xf]  ;;  %v1398_v55 = vld [vmem:[#allocation3 + $0x1c] sm:$0xf] }
  0x9f   : > { %v789_v6 = vsel %vm304_vm12, %v785_v0, %v786_v63  ;;  %1072 = vmatprep.subr.bf16.mxu0 %v2164_v4  ;;  %vm3179_vm3 = vcmp.ne.s16.totalorder %v2558_v53, 0  ;;  %v279_v63 = vrot.slane %v2447_v36, 4  ;;  %v642_v0 = vsel %vm2560_vm2, %v2108_v62, 0 }
  0xa0   : > { %v784_v8 = vpop.permute.xlu1 %783  ;;  %v782_v10 = vpop.permute.xlu0 %781  ;;  %1073 = vmatpush1.bf16.msra.mxu0 %v2163_v5  ;;  %v790_v20 = vsel %vm3178_vm13, %v778_v60, %v789_v6  ;;  %v360_v58 = vsel %vm3179_vm3, %v2398_v17, 0  ;;  %v363_v60 = vsel %vm2560_vm2, %v346_v59, 0  ;;  %v362_v61 = vsel %vm3179_vm3, %v2405_v19, 0  ;;  %v268_v5 = vld [vmem:[%s2364_s28 + $0x8] sm:$0xf] }
  0xa1   : > { %457 = vrot.lane.b32.xlu1 %v446_v7, %s2309_s22  ;;  %v788_v16 = vrot.slane %v784_v8, 4  ;;  %v787_v18 = vrot.slane %v782_v10, 4  ;;  %v641_v1 = vsel %vm3179_vm3, %v2412_v21, 0  ;;  %v2600_v3 = vsel %vm3183_vm4, %v279_v63, %v2447_v36  ;;  %v1364_v59 = vld [vmem:[#allocation3 + $0xc] sm:$0xf] }
  0xa2   : > { %455 = vrot.lane.b32.xlu0 %v445_v12, %s2309_s22  ;;  %vm2602_vm5 = vcmp.ne.s16.totalorder %v279_v63, 0  ;;  %v644_v6 = vsel %vm2560_vm2, %v2110_v2, 0  ;;  %v643_v7 = vsel %vm3179_vm3, %v2419_v23, 0  ;;  %vm306_vm3 = vcmask 138240  }
  0xa3   : > { %v791_v24 = vsel %vm304_vm12, %v787_v18, %v788_v16  ;;  %v285_v36 = vsel %vm2602_vm5, %v268_v5, 0  ;;  %v2100_v16 = vld [vmem:[%s2364_s28 + $0x28] sm:$0xf]  ;;  %v544_v18 = vrot.slane %v2449_v37, 4  ;;  %v1584_v5 = vld [vmem:[#allocation3 + $0x2c] sm:$0xf] }
  0xa4   : > { %v792_v27 = vsel %vm3178_vm13, %v782_v10, %v791_v24  ;;  %vm3182_vm13 = vcmp.ne.s16.totalorder %v2600_v3, 0  ;;  %v270_v10 = vld [vmem:[%s2364_s28 + $0x18] sm:$0xf]  ;;  %v2688_v43 = vpop.permute.xlu1 %324  ;;  %v1744_v24 = vld [vmem:[%s3176_s4] sm:$0xff] }
  0xa5   : > { %719 = vrot.lane.b32.xlu1 %v710_v26, %s2309_s22  ;;  %v2166_v33 = vcombine.high %v790_v20, %v792_v27  ;;  %v2165_v34 = vcombine.low %v790_v20, %v792_v27  ;;  %v284_v8 = vsel %vm3182_vm13, %v2398_v17, 0  ;;  %v287_v12 = vsel %vm2602_vm5, %v270_v10, 0  ;;  %v539_v26 = vld [vmem:[%s2364_s28 + $0xc] sm:$0xf] }
  0xa6   : > { %717 = vrot.lane.b32.xlu0 %v709_v30, %s2309_s22  ;;  %v286_v14 = vsel %vm3182_vm13, %v2405_v19, 0  ;;  %v582_v17 = vsel %vm2602_vm5, %v2100_v16, 0  ;;  %v581_v20 = vsel %vm3182_vm13, %v2412_v21, 0  ;;  %v2642_v19 = vsel %vm306_vm3, %v544_v18, %v2449_v37 }
  0xa7   : > { %1115 = vmatprep.subr.bf16.mxu1 %v2166_v33  ;;  %vm2644_vm0 = vcmp.ne.s16.totalorder %v544_v18, 0  ;;  %v584_v27 = vsel %vm2602_vm5, %v2102_v22, 0  ;;  %v583_v21 = vsel %vm3182_vm13, %v2419_v23, 0  ;;  %vm546_vm11 = vcmp.ne.s16.totalorder %v2642_v19, 0  ;;  %v1426_v22 = vld [vmem:[#allocation3 + $0x1c] sm:$0xf] }
  0xa8   : > { %1116 = vmatpush1.bf16.msra.mxu1 %v2165_v34  ;;  %v549_v37 = vsel %vm2644_vm0, %v539_v26, 0  ;;  %v548_v30 = vsel %vm546_vm11, %v2370_v9, 0  ;;  %v551_v23 = vsel %vm2644_vm0, %v541_v31, 0  ;;  %v550_v33 = vsel %vm546_vm11, %v2377_v11, 0  ;;  %v2130_v34 = vld [vmem:[%s2364_s28 + $0x2c] sm:$0xf] }
  0xa9   : > { %723 = vrot.lane.b32.xlu1 %v712_v40, %s2309_s22  ;;  %vm335_vm13 = vcmask 130048   ;;  %v802_v40 = vsel %vm2644_vm0, %v2130_v34, 0 }
  0xaa   : > { %721 = vrot.lane.b32.xlu0 %v711_v41, %s2309_s22  ;;  %2171 = vmatprep.mubr.msk.bf16.mxu0 %vm335_vm13, %v2292_v39  ;;  %v801_v41 = vsel %vm546_vm11, %v2384_v13, 0 }
  0xab   : > { %2172 = vmatprep.mubr.msk.bf16.mxu1 %vm335_vm13, %v2292_v39 }
  0xad   : > { %410 = vrot.lane.b32.xlu1 %v401_v25, %s2310_s24  ;;  %v2132_v25 = vld [vmem:[%s2364_s28 + $0x3c] sm:$0xf] }
  0xae   : > { %408 = vrot.lane.b32.xlu0 %v400_v42, %s2310_s24  ;;  %v804_v42 = vsel %vm2644_vm0, %v2132_v25, 0 }
  0xb1   : > { %414 = vrot.lane.b32.xlu1 %v403_v44, %s2310_s24  ;;  %v803_v44 = vsel %vm546_vm11, %v2391_v15, 0 }
  0xb2   : > { %412 = vrot.lane.b32.xlu0 %v402_v45, %s2310_s24  ;;  %v2694_v45 = vpop.permute.xlu0 %322 }
  0xb5   : > { %683 = vrot.lane.b32.xlu1 %v674_v50, %s2310_s24  ;;  %v1650_v50 = vld [vmem:[#allocation3 + $0x3c] sm:$0xf] }
  0xb6   : > { %681 = vrot.lane.b32.xlu0 %v673_v51, %s2310_s24  ;;  %v867_v51 = vld [vmem:[%s3174_s2] sm:$0xff]  ;;  %v2705_v62 = vpop.permute.xlu0 %326 }
  0xb9   : > { %687 = vrot.lane.b32.xlu1 %v676_v56, %s2310_s24  ;;  %v2251_v56 = vpack.i.bf16 %v1650_v50, %v1648_v49 }
  0xba   : > { %685 = vrot.lane.b32.xlu0 %v675_v57, %s2310_s24  ;;  %v1616_v57 = vld [vmem:[#allocation3 + $0x2c] sm:$0xf] }
  0xbb   : > { %v1620_v63 = vsel %vm2430_vm7, %v1616_v57, 0 }
  0xbd   : > { %370 = vrot.lane.b32.xlu1 %v361_v32, %s2308_s21  ;;  %v1618_v32 = vld [vmem:[#allocation3 + $0x3c] sm:$0xf] }
  0xbe   : > { %368 = vrot.lane.b32.xlu0 %v360_v58, %s2308_s21  ;;  %v2246_v58 = vpack.i.bf16 %v1398_v55, %v1396_v52 }
  0xc1   : > { %374 = vrot.lane.b32.xlu1 %v363_v60, %s2308_s21  ;;  %v1366_v60 = vld [vmem:[#allocation3 + $0x1c] sm:$0xf] }
  0xc2   : > { %372 = vrot.lane.b32.xlu0 %v362_v61, %s2308_s21  ;;  %v2703_v61 = vpop.permute.xlu1 %328  ;;  %v1370_v2 = vsel %vm2430_vm7, %v1366_v60, 0 }
  0xc5   : > { %651 = vrot.lane.b32.xlu1 %v642_v0, %s2308_s21  ;;  %v1622_v0 = vsel %vm2430_vm7, %v1618_v32, 0 }
  0xc6   : > { %649 = vrot.lane.b32.xlu0 %v641_v1, %s2308_s21  ;;  %v1368_v1 = vsel %vm2430_vm7, %v1364_v59, 0  ;;  %v2721_v16 = vpop.permute.xlu1 %619  ;;  %vm3196_vm7 = vcmp.ne.s16.totalorder %v2465_v46, 0 }
  0xc7   : > { %v2256_v10 = vpack.i.bf16 %v1370_v2, %v1368_v1 }
  0xc9   : > { %655 = vrot.lane.b32.xlu1 %v644_v6, %s2308_s21  ;;  %v1586_v6 = vld [vmem:[#allocation3 + $0x3c] sm:$0xf] }
  0xca   : > { %653 = vrot.lane.b32.xlu0 %v643_v7, %s2308_s21  ;;  %v1332_v7 = vld [vmem:[#allocation3 + $0xc] sm:$0xf]  ;;  %v2737_v47 = vpop.permute.xlu1 %623 }
  0xcb   : > { %v1336_v29 = vsel %vm2468_vm10, %v1332_v7, 0 }
  0xcd   : > { %294 = vrot.lane.b32.xlu1 %v285_v36, %s2313_s30  ;;  %v1334_v36 = vld [vmem:[#allocation3 + $0x1c] sm:$0xf] }
  0xce   : > { %292 = vrot.lane.b32.xlu0 %v284_v8, %s2313_s30  ;;  %v2261_v8 = vpack.i.bf16 %v1622_v0, %v1620_v63  ;;  %v1338_v18 = vsel %vm2468_vm10, %v1334_v36, 0 }
  0xd1   : > { %298 = vrot.lane.b32.xlu1 %v287_v12, %s2313_s30  ;;  %v1588_v12 = vsel %vm2468_vm10, %v1584_v5, 0 }
  0xd2   : > { %296 = vrot.lane.b32.xlu0 %v286_v14, %s2313_s30  ;;  %v1590_v14 = vsel %vm2468_vm10, %v1586_v6, 0  ;;  %vm3197_vm10 = vmmov %vm3196_vm7 }
  0xd3   : > { %v2271_v26 = vpack.i.bf16 %v1590_v14, %v1588_v12 }
  0xd5   : > { %591 = vrot.lane.b32.xlu1 %v582_v17, %s2313_s30  ;;  %v2728_v17 = vpop.permute.xlu0 %617 }
  0xd6   : > { %589 = vrot.lane.b32.xlu0 %v581_v20, %s2313_s30  ;;  %v1424_v20 = vld [vmem:[#allocation3 + $0xc] sm:$0xf] }
  0xd9   : > { %595 = vrot.lane.b32.xlu1 %v584_v27, %s2313_s30  ;;  %v2266_v27 = vpack.i.bf16 %v1338_v18, %v1336_v29 }
  0xda   : > { %593 = vrot.lane.b32.xlu0 %v583_v21, %s2313_s30  ;;  %v1428_v21 = vsel %vm2644_vm0, %v1424_v20, 0 }
  0xdd   : > { %558 = vrot.lane.b32.xlu1 %v549_v37, %s2312_s29  ;;  %v1430_v37 = vsel %vm2644_vm0, %v1426_v22, 0 }
  0xde   : > { %556 = vrot.lane.b32.xlu0 %v548_v30, %s2312_s29  ;;  %v2739_v30 = vpop.permute.xlu0 %621  ;;  %v2276_v31 = vpack.i.bf16 %v1430_v37, %v1428_v21 }
  0xe1   : > { %562 = vrot.lane.b32.xlu1 %v551_v23, %s2312_s29 }
  0xe2   : > { %560 = vrot.lane.b32.xlu0 %v550_v33, %s2312_s29 }
  0xe5   : > { %811 = vrot.lane.b32.xlu1 %v802_v40, %s2312_s29 }
  0xe6   : > { %809 = vrot.lane.b32.xlu0 %v801_v41, %s2312_s29 }
  0xe9   : > { %815 = vrot.lane.b32.xlu1 %v804_v42, %s2312_s29 }
  0xea   : > { %813 = vrot.lane.b32.xlu0 %v803_v44, %s2312_s29 }
  0xed   : > { %876 = vperm.xlu1 %2245, %v868_v48  }
  0xee   : > { %871 = vperm.xlu0 %2244, %v867_v51  }
  0xf1   : > { %2252 = vrot.lane.b32.xlu1 %v2251_v56, %s2314_s6 }
  0xf2   : > { %2247 = vrot.lane.b32.xlu0 %v2246_v58, %s2314_s6 }
  0xf5   : > { %2262 = vrot.lane.b32.xlu1 %v2261_v8, %s2311_s25 }
  0xf6   : > { %2257 = vrot.lane.b32.xlu0 %v2256_v10, %s2311_s25 }
  0xf9   : > { %2272 = vrot.lane.b32.xlu1 %v2271_v26, %s2309_s22 }
  0xfa   : > { %2267 = vrot.lane.b32.xlu0 %v2266_v27, %s2309_s22 }
  0xfe   : > { %2277 = vrot.lane.b32.xlu0 %v2276_v31, %s2312_s29 }
  0xff   : > { %v492_v23 = vpop.permute.xlu1 %491 }
 0x100   : > { %v490_v33 = vpop.permute.xlu0 %489  ;;  %v498_v34 = vrot.slane %v492_v23, 4  ;;  %v2152_v23 = vcombine.high %v2370_v9, %v2377_v11 }
 0x101   : > { %v497_v39 = vrot.slane %v490_v33, 4 }
 0x103   : > { %v496_v40 = vpop.permute.xlu1 %495  ;;  %v501_v42 = vsel %vm304_vm12, %v497_v39, %v498_v34 }
 0x104   : > { %v500_v41 = vrot.slane %v496_v40, 4  ;;  %v494_v25 = vpop.permute.xlu0 %493  ;;  %v502_v50 = vsel %vm356_vm1, %v490_v33, %v501_v42 }
 0x105   : > { %v499_v44 = vrot.slane %v494_v25, 4 }
 0x107   : > { %v503_v48 = vsel %vm304_vm12, %v499_v44, %v500_v41  ;;  %v752_v49 = vpop.permute.xlu1 %751  ;;  %v2151_v44 = vcombine.low %v2370_v9, %v2377_v11 }
 0x108   : > { %v504_v51 = vsel %vm356_vm1, %v494_v25, %v503_v48  ;;  %v750_v52 = vpop.permute.xlu0 %749  ;;  %v758_v55 = vrot.slane %v752_v49, 4 }
 0x109   : > { %v757_v56 = vrot.slane %v750_v52, 4  ;;  %v2160_v57 = vcombine.high %v502_v50, %v504_v51  ;;  %v2159_v32 = vcombine.low %v502_v50, %v504_v51 }
 0x10b   : > { %v756_v58 = vpop.permute.xlu1 %755  ;;  %1074 = vmatprep.subr.bf16.mxu0 %v2160_v57  ;;  %v761_v63 = vsel %vm304_vm12, %v757_v56, %v758_v55  ;;  %v2154_v57 = vcombine.high %v2384_v13, %v2391_v15 }
 0x10c   : > { %v760_v59 = vrot.slane %v756_v58, 4  ;;  %1075 = vmatpush1.bf16.msra.mxu0 %v2159_v32  ;;  %v754_v60 = vpop.permute.xlu0 %753  ;;  %v762_v5 = vsel %vm356_vm1, %v750_v52, %v761_v63 }
 0x10d   : > { %v759_v0 = vrot.slane %v754_v60, 4 }
 0x10f   : > { %v763_v1 = vsel %vm304_vm12, %v759_v0, %v760_v59  ;;  %v454_v2 = vpop.permute.xlu1 %453  ;;  %v2153_v0 = vcombine.low %v2384_v13, %v2391_v15 }
 0x110   : > { %v764_v6 = vsel %vm356_vm1, %v754_v60, %v763_v1  ;;  %v452_v7 = vpop.permute.xlu0 %451  ;;  %v460_v36 = vrot.slane %v454_v2, 4 }
 0x111   : > { %v459_v8 = vrot.slane %v452_v7, 4  ;;  %v2162_v10 = vcombine.high %v762_v5, %v764_v6  ;;  %v2161_v12 = vcombine.low %v762_v5, %v764_v6 }
 0x113   : > { %v458_v14 = vpop.permute.xlu1 %457  ;;  %1117 = vmatprep.subr.bf16.mxu1 %v2162_v10  ;;  %v463_v20 = vsel %vm304_vm12, %v459_v8, %v460_v36 }
 0x114   : > { %v462_v29 = vrot.slane %v458_v14, 4  ;;  %1118 = vmatpush1.bf16.msra.mxu1 %v2161_v12  ;;  %v456_v18 = vpop.permute.xlu0 %455  ;;  %v464_v21 = vsel %vm396_vm14, %v452_v7, %v463_v20 }
 0x115   : > { %v461_v22 = vrot.slane %v456_v18, 4 }
 0x117   : > { %v465_v26 = vsel %vm304_vm12, %v461_v22, %v462_v29  ;;  %v720_v27 = vpop.permute.xlu1 %719 }
 0x118   : > { %v466_v37 = vsel %vm396_vm14, %v456_v18, %v465_v26  ;;  %v718_v31 = vpop.permute.xlu0 %717  ;;  %v726_v39 = vrot.slane %v720_v27, 4  ;;  %v331_v26 = vrot.slane %v2688_v43, 4  ;;  %v330_v27 = vrot.slane %v2694_v45, 4 }
 0x119   : > { %v2155_v33 = vcombine.low %v464_v21, %v466_v37  ;;  %v2156_v34 = vcombine.high %v464_v21, %v466_v37  ;;  %v725_v40 = vrot.slane %v718_v31, 4 }
 0x11a   : > { %v334_v43 = vsel %vm304_vm12, %v330_v27, %v331_v26 }
 0x11b   : > { %v724_v41 = vpop.permute.xlu1 %723  ;;  %1076 = vmatprep.subr.bf16.mxu0 %v2156_v34  ;;  %v729_v48 = vsel %vm304_vm12, %v725_v40, %v726_v39 }
 0x11c   : > { %v728_v25 = vrot.slane %v724_v41, 4  ;;  %1077 = vmatpush1.bf16.msra.mxu0 %v2155_v33  ;;  %v722_v42 = vpop.permute.xlu0 %721  ;;  %v730_v52 = vsel %vm396_vm14, %v718_v31, %v729_v48  ;;  %v333_v31 = vrot.slane %v2703_v61, 4 }
 0x11d   : > { %v727_v49 = vrot.slane %v722_v42, 4  ;;  %1078 = vmatprep.subr.bf16.mxu0 %v2152_v23  ;;  %v332_v23 = vrot.slane %v2705_v62, 4 }
 0x11f   : > { %v731_v50 = vsel %vm304_vm12, %v727_v49, %v728_v25  ;;  %v411_v51 = vpop.permute.xlu1 %410  ;;  %v337_v48 = vsel %vm304_vm12, %v332_v23, %v333_v31 }
 0x120   : > { %v732_v55 = vsel %vm396_vm14, %v722_v42, %v731_v50  ;;  %v409_v56 = vpop.permute.xlu0 %408  ;;  %1079 = vmatpush1.bf16.msra.mxu0 %v2151_v44  ;;  %v417_v59 = vrot.slane %v411_v51, 4 }
 0x121   : > { %v2157_v32 = vcombine.low %v730_v52, %v732_v55  ;;  %v2158_v58 = vcombine.high %v730_v52, %v732_v55  ;;  %v416_v9 = vrot.slane %v409_v56, 4  ;;  %v336_v52 = vsel %vm335_vm13, %v2694_v45, %v334_v43 }
 0x122   : > { %v338_v55 = vsel %vm335_vm13, %v2705_v62, %v337_v48 }
 0x123   : > { %v415_v11 = vpop.permute.xlu1 %414  ;;  %1119 = vmatprep.subr.bf16.mxu1 %v2158_v58  ;;  %v420_v1 = vsel %vm304_vm12, %v416_v9, %v417_v59  ;;  %v628_v59 = vrot.slane %v2737_v47, 4  ;;  %v627_v9 = vrot.slane %v2739_v30, 4 }
 0x124   : > { %v419_v60 = vrot.slane %v415_v11, 4  ;;  %1120 = vmatpush1.bf16.msra.mxu1 %v2157_v32  ;;  %v413_v63 = vpop.permute.xlu0 %412  ;;  %v422_v7 = vsel %vm421_vm9, %v409_v56, %v420_v1  ;;  %v626_v56 = vrot.slane %v2721_v16, 4  ;;  %v2140_v16 = vcombine.high %v336_v52, %v338_v55 }
 0x125   : > { %v418_v2 = vrot.slane %v413_v63, 4  ;;  %1121 = vmatprep.subr.bf16.mxu1 %v2154_v57  ;;  %v625_v57 = vrot.slane %v2728_v17, 4  ;;  %v631_v47 = vsel %vm304_vm12, %v627_v9, %v628_v59 }
 0x127   : > { %v423_v5 = vsel %vm304_vm12, %v418_v2, %v419_v60  ;;  %v684_v6 = vpop.permute.xlu1 %683 }
 0x128   : > { %v424_v36 = vsel %vm421_vm9, %v413_v63, %v423_v5  ;;  %v682_v8 = vpop.permute.xlu0 %681  ;;  %1122 = vmatpush1.bf16.msra.mxu1 %v2153_v0  ;;  %v690_v14 = vrot.slane %v684_v6, 4 }
 0x129   : > { %v2147_v10 = vcombine.low %v422_v7, %v424_v36  ;;  %v2148_v12 = vcombine.high %v422_v7, %v424_v36  ;;  %v689_v29 = vrot.slane %v682_v8, 4  ;;  %v629_v7 = vsel %vm304_vm12, %v625_v57, %v626_v56 }
 0x12b   : > { %v688_v18 = vpop.permute.xlu1 %687  ;;  %1080 = vmatprep.subr.bf16.mxu0 %v2148_v12  ;;  %v693_v20 = vsel %vm304_vm12, %v689_v29, %v690_v14  ;;  %v630_v29 = vsel %vm335_vm13, %v2728_v17, %v629_v7 }
 0x12c   : > { %v692_v13 = vrot.slane %v688_v18, 4  ;;  %1081 = vmatpush1.bf16.msra.mxu0 %v2147_v10  ;;  %v686_v15 = vpop.permute.xlu0 %685  ;;  %v694_v33 = vsel %vm421_vm9, %v682_v8, %v693_v20  ;;  %v2139_v10 = vcombine.low %v336_v52, %v338_v55  ;;  %v632_v18 = vsel %vm335_vm13, %v2739_v30, %v631_v47 }
 0x12d   : > { %v691_v22 = vrot.slane %v686_v15, 4  ;;  %v2142_v31 = vcombine.high %v630_v29, %v632_v18  ;;  %v2141_v30 = vcombine.low %v630_v29, %v632_v18  ;;  %v2290_v29 = vld [vmem:[%s3173_s1] ss:$8 sps:$4 sm:$0xff]  }
 0x12f   : > { %v695_v21 = vsel %vm304_vm12, %v691_v22, %v692_v13  ;;  %v371_v37 = vpop.permute.xlu1 %370 }
 0x130   : > { %v696_v34 = vsel %vm421_vm9, %v686_v15, %v695_v21  ;;  %v369_v39 = vpop.permute.xlu0 %368  ;;  %v377_v25 = vrot.slane %v371_v37, 4 }
 0x131   : > { %v2149_v40 = vcombine.low %v694_v33, %v696_v34  ;;  %v2150_v41 = vcombine.high %v694_v33, %v696_v34  ;;  %v376_v42 = vrot.slane %v369_v39, 4 }
 0x133   : > { %v375_v44 = vpop.permute.xlu1 %374  ;;  %1123 = vmatprep.subr.bf16.mxu1 %v2150_v41  ;;  %v380_v50 = vsel %vm304_vm12, %v376_v42, %v377_v25 }
 0x134   : > { %v379_v49 = vrot.slane %v375_v44, 4  ;;  %1124 = vmatpush1.bf16.msra.mxu1 %v2149_v40  ;;  %v373_v61 = vpop.permute.xlu0 %372  ;;  %v382_v11 = vsel %vm381_vm6, %v369_v39, %v380_v50 }
 0x135   : > { %v378_v51 = vrot.slane %v373_v61, 4 }
 0x137   : > { %v383_v32 = vsel %vm304_vm12, %v378_v51, %v379_v49  ;;  %v652_v58 = vpop.permute.xlu1 %651 }
 0x138   : > { %v384_v60 = vsel %vm381_vm6, %v373_v61, %v383_v32  ;;  %v650_v63 = vpop.permute.xlu0 %649  ;;  %v658_v1 = vrot.slane %v652_v58, 4 }
 0x139   : > { %v2143_v45 = vcombine.low %v382_v11, %v384_v60  ;;  %v2144_v0 = vcombine.high %v382_v11, %v384_v60  ;;  %v657_v62 = vrot.slane %v650_v63, 4 }
 0x13b   : > { %v656_v2 = vpop.permute.xlu1 %655  ;;  %1082 = vmatprep.subr.bf16.mxu0 %v2144_v0  ;;  %v661_v36 = vsel %vm304_vm12, %v657_v62, %v658_v1 }
 0x13c   : > { %v660_v5 = vrot.slane %v656_v2, 4  ;;  %1083 = vmatpush1.bf16.msra.mxu0 %v2143_v45  ;;  %v654_v6 = vpop.permute.xlu0 %653  ;;  %v662_v13 = vsel %vm381_vm6, %v650_v63, %v661_v36 }
 0x13d   : > { %v659_v8 = vrot.slane %v654_v6, 4  ;;  %1084 = vmatprep.subr.bf16.mxu0 %v2140_v16 }
 0x13f   : > { %v663_v12 = vsel %vm304_vm12, %v659_v8, %v660_v5  ;;  %v295_v14 = vpop.permute.xlu1 %294 }
 0x140   : > { %v664_v15 = vsel %vm381_vm6, %v654_v6, %v663_v12  ;;  %1085 = vmatpush1.bf16.msra.mxu0 %v2139_v10  ;;  %v293_v20 = vpop.permute.xlu0 %292  ;;  %v301_v27 = vrot.slane %v295_v14, 4 }
 0x141   : > { %v2145_v22 = vcombine.low %v662_v13, %v664_v15  ;;  %v2146_v26 = vcombine.high %v662_v13, %v664_v15  ;;  %v300_v21 = vrot.slane %v293_v20, 4 }
 0x143   : > { %1125 = vmatprep.subr.bf16.mxu1 %v2146_v26  ;;  %v299_v37 = vpop.permute.xlu1 %298  ;;  %v305_v17 = vsel %vm304_vm12, %v300_v21, %v301_v27 }
 0x144   : > { %v303_v23 = vrot.slane %v299_v37, 4  ;;  %1126 = vmatpush1.bf16.msra.mxu1 %v2145_v22  ;;  %v297_v33 = vpop.permute.xlu0 %296  ;;  %v307_v41 = vsel %vm306_vm3, %v293_v20, %v305_v17 }
 0x145   : > { %v302_v34 = vrot.slane %v297_v33, 4  ;;  %1127 = vmatprep.subr.bf16.mxu1 %v2142_v31 }
 0x147   : > { %v308_v39 = vsel %vm304_vm12, %v302_v34, %v303_v23  ;;  %v592_v40 = vpop.permute.xlu1 %591 }
 0x148   : > { %v309_v25 = vsel %vm306_vm3, %v297_v33, %v308_v39  ;;  %1128 = vmatpush1.bf16.msra.mxu1 %v2141_v30  ;;  %v590_v42 = vpop.permute.xlu0 %589  ;;  %v598_v48 = vrot.slane %v592_v40, 4 }
 0x149   : > { %v2135_v43 = vcombine.low %v307_v41, %v309_v25  ;;  %v2136_v44 = vcombine.high %v307_v41, %v309_v25  ;;  %v597_v49 = vrot.slane %v590_v42, 4 }
 0x14b   : > { %v596_v61 = vpop.permute.xlu1 %595  ;;  %1086 = vmatprep.subr.bf16.mxu0 %v2136_v44  ;;  %v601_v52 = vsel %vm304_vm12, %v597_v49, %v598_v48 }
 0x14c   : > { %v600_v50 = vrot.slane %v596_v61, 4  ;;  %1087 = vmatpush1.bf16.msra.mxu0 %v2135_v43  ;;  %v594_v51 = vpop.permute.xlu0 %593  ;;  %v602_v32 = vsel %vm306_vm3, %v590_v42, %v601_v52 }
 0x14d   : > { %v599_v55 = vrot.slane %v594_v51, 4 }
 0x14f   : > { %v603_v56 = vsel %vm304_vm12, %v599_v55, %v600_v50  ;;  %v559_v57 = vpop.permute.xlu1 %558 }
 0x150   : > { %v604_v58 = vsel %vm306_vm3, %v594_v51, %v603_v56  ;;  %v557_v59 = vpop.permute.xlu0 %556  ;;  %v565_v60 = vrot.slane %v559_v57, 4 }
 0x151   : > { %v2137_v9 = vcombine.low %v602_v32, %v604_v58  ;;  %v2138_v11 = vcombine.high %v602_v32, %v604_v58  ;;  %v564_v63 = vrot.slane %v557_v59, 4 }
 0x153   : > { %v563_v45 = vpop.permute.xlu1 %562  ;;  %1129 = vmatprep.subr.bf16.mxu1 %v2138_v11  ;;  %v568_v62 = vsel %vm304_vm12, %v564_v63, %v565_v60 }
 0x154   : > { %v567_v0 = vrot.slane %v563_v45, 4  ;;  %1130 = vmatpush1.bf16.msra.mxu1 %v2137_v9  ;;  %v561_v1 = vpop.permute.xlu0 %560  ;;  %v569_v6 = vsel %vm3183_vm4, %v557_v59, %v568_v62 }
 0x155   : > { %v566_v2 = vrot.slane %v561_v1, 4 }
 0x157   : > { %v570_v16 = vsel %vm304_vm12, %v566_v2, %v567_v0  ;;  %v812_v5 = vpop.permute.xlu1 %811 }
 0x158   : > { %v571_v7 = vsel %vm3183_vm4, %v561_v1, %v570_v16  ;;  %v810_v47 = vpop.permute.xlu0 %809  ;;  %v818_v10 = vrot.slane %v812_v5, 4 }
 0x159   : > { %v2167_v36 = vcombine.low %v569_v6, %v571_v7  ;;  %v2168_v8 = vcombine.high %v569_v6, %v571_v7  ;;  %v817_v12 = vrot.slane %v810_v47, 4 }
 0x15b   : > { %v816_v14 = vpop.permute.xlu1 %815  ;;  %1102 = vmatprep.subr.bf16.mxu0 %v2168_v8  ;;  %v821_v15 = vsel %vm304_vm12, %v817_v12, %v818_v10 }
 0x15c   : > { %v820_v18 = vrot.slane %v816_v14, 4  ;;  %1103 = vmatpush2.bf16.msra.mxu0 %v2167_v36  ;;  %v814_v13 = vpop.permute.xlu0 %813  ;;  %v822_v26 = vsel %vm3183_vm4, %v810_v47, %v821_v15 }
 0x15d   : > { %v819_v20 = vrot.slane %v814_v13, 4 }
 0x15f   : > { %v823_v22 = vsel %vm304_vm12, %v819_v20, %v820_v18  ;;  %1105 = vmatmul.mubr.bf16.vlgmr.msra.gmra.mxu0 %v2290_v29 }
 0x160   : > { %v824_v27 = vsel %vm3183_vm4, %v814_v13, %v823_v22  ;;  %vm3198_vm4 = vcmp.ne.s16.totalorder %v2516_v35, 0 }
 0x161   : > { %v2169_v21 = vcombine.low %v822_v26, %v824_v27  ;;  %v2170_v37 = vcombine.high %v822_v26, %v824_v27 }
 0x163   : > { %1145 = vmatprep.subr.bf16.mxu1 %v2170_v37 }
 0x164   : > { %1146 = vmatpush2.bf16.msra.mxu1 %v2169_v21 }
 0x167   : > { %1148 = vmatmul.mubr.bf16.vlgmr.msra.gmra.mxu1 %v2290_v29 }
 0x168   : > { %v877_v39 = vpop.permute.xlu1 %876 }
 0x169   : > { %v872_v31 = vpop.permute.xlu0 %871 }
 0x21f   : > { %v1106_v23 = vpop.f32.mrf.mxu0 }
 0x220   : > { %v1107_v33 = vadd.f32 %v1106_v23, %v872_v31 }
 0x221   : > { %v1108_v17 = vpop.f32.mrf.mxu0 }
 0x222   : > { %v1158_v34 = vmax.f32 %v1107_v33, 0.0  ;;  %v1109_v30 = vadd.f32 %v1108_v17, %v872_v31 }
 0x223   : > { %v1110_v40 = vpop.f32.mrf.mxu0 }
 0x224   : > { %v1159_v41 = vmax.f32 %v1109_v30, 0.0  ;;  %v1111_v25 = vadd.f32 %v1110_v40, %v877_v39 }
 0x225   : > { %v1112_v42 = vpop.f32.mrf.mxu0 }
 0x226   : > { %v2821_v43 = vpack.c.bf16 %v1159_v41, %v1158_v34  ;;  %v1113_v44 = vadd.f32 %v1112_v42, %v877_v39  ;;  %v1162_v49 = vmax.f32 %v1111_v25, 0.0 }
 0x227   : > { %v1149_v48 = vpop.f32.mrf.mxu1 }
 0x228   : > { %1186 = vst [vmem:[#allocation3 + $0x4] sm:$0xff] %v2821_v43  ;;  %v1163_v61 = vmax.f32 %v1113_v44, 0.0  ;;  %v1150_v50 = vadd.f32 %v1149_v48, %v872_v31  ;;  %1403 = vrot.lane.b32.xlu1 %v2821_v43, %s2314_s6  ;;  %v2829_v9 = vpack.c.bf16 %v1162_v49, %v1158_v34  ;;  %v1367_v47 = vsel %vm479_vm8, %v2821_v43, 0 }
 0x229   : > { %v1151_v51 = vpop.f32.mrf.mxu1  ;;  %v1335_v8 = vsel %vm3196_vm7, %v2821_v43, 0  ;;  %vm3199_vm7 = vmmov %vm3198_vm4 }
 0x22a   : > { %v2826_v52 = vpack.c.bf16 %v1163_v61, %v1162_v49  ;;  %v1152_v55 = vadd.f32 %v1151_v51, %v872_v31  ;;  %v1160_v57 = vmax.f32 %v1150_v50, 0.0  ;;  %v2831_v11 = vpack.c.bf16 %v1163_v61, %v1159_v41 }
 0x22b   : > { %v1153_v56 = vpop.f32.mrf.mxu1 }
 0x22c   : > { %1187 = vst [vmem:[#allocation3 + $0x14] sm:$0xff] %v2826_v52  ;;  %v1161_v32 = vmax.f32 %v1152_v55, 0.0  ;;  %v1154_v58 = vadd.f32 %v1153_v56, %v877_v39  ;;  %v1369_v44 = vsel %vm479_vm8, %v2826_v52, 0 }
 0x22d   : > { %v1155_v59 = vpop.f32.mrf.mxu1 }
 0x22e   : > { %v2225_v60 = vpack.c.bf16 %v1161_v32, %v1160_v57  ;;  %v1156_v63 = vadd.f32 %v1155_v59, %v877_v39  ;;  %v1164_v0 = vmax.f32 %v1154_v58, 0.0  ;;  %v1427_v39 = vsel %vm546_vm11, %v2821_v43, 0 }
 0x22f   : > { %v1235_v45 = vld [vmem:[#allocation3] sm:$0xff]  ;;  %v1236_v2 = vld [vmem:[#allocation3 + $0x8] sm:$0xf] }
 0x230   : > { %1201 = vst [vmem:[#allocation3 + $0x24] sm:$0xff] %v2225_v60  ;;  %v1165_v1 = vmax.f32 %v1156_v63, 0.0  ;;  %1243 = vrot.lane.b32.xlu1 %v1235_v45, %s2315_s7  ;;  %1655 = vrot.lane.b32.xlu0 %v2225_v60, %s2314_s6  ;;  %v2839_v16 = vpack.c.bf16 %v1164_v0, %v1160_v57  ;;  %v1619_v36 = vsel %vm479_vm8, %v2225_v60, 0  ;;  %v1587_v10 = vsel %vm3197_vm10, %v2225_v60, 0  ;;  %v1296_v12 = vld [vmem:[#allocation3 + $0x8] sm:$0xf] }
 0x231   : > { %v1299_v14 = vsel %vm3198_vm4, %v1235_v45, 0  ;;  %v1300_v29 = vsel %vm2518_vm15, %v1296_v12, 0  ;;  %v1264_v20 = vld [vmem:[#allocation3 + $0x8] sm:$0xf]  ;;  %vm3200_vm4 = vcmp.ne.s16.totalorder %v2558_v53, 0  ;;  %v1679_v40 = vsel %vm546_vm11, %v2225_v60, 0 }
 0x232   : > { %v2835_v62 = vpack.c.bf16 %v1165_v1, %v1164_v0  ;;  %v2841_v5 = vpack.c.bf16 %v1165_v1, %v1161_v32  ;;  %v1267_v22 = vsel %vm3200_vm4, %v1235_v45, 0  ;;  %v1268_v26 = vsel %vm2560_vm2, %v1264_v20, 0  ;;  %vm3201_vm10 = vmmov %vm3200_vm4  ;;  %v1204_v31 = vld [vmem:[#allocation3 + $0x8] sm:$0xf]  ;;  %v1676_v1 = vld [vmem:[#allocation3 + $0x2c] sm:$0xf] }
 0x233   : > { %v1208_v33 = vsel %vm2602_vm5, %v1204_v31, 0  ;;  %v1237_v41 = vld [vmem:[#allocation3 + $0x10] sm:$0xff]  ;;  %v1238_v25 = vld [vmem:[#allocation3 + $0x18] sm:$0xf]  ;;  %v1680_v4 = vsel %vm2644_vm0, %v1676_v1, 0 }
 0x234   : > { %1202 = vst [vmem:[#allocation3 + $0x34] sm:$0xff] %v2835_v62  ;;  %1245 = vrot.lane.b32.xlu0 %v1236_v2, %s2315_s7  ;;  %v1621_v48 = vsel %vm479_vm8, %v2835_v62, 0  ;;  %v1298_v50 = vld [vmem:[#allocation3 + $0x18] sm:$0xf]  ;;  %v1678_v2 = vld [vmem:[#allocation3 + $0x3c] sm:$0xf] }
 0x235   : > { %v1302_v51 = vsel %vm2518_vm15, %v1298_v50, 0  ;;  %v1266_v57 = vld [vmem:[#allocation3 + $0x18] sm:$0xf] }
 0x236   : > { %v1270_v58 = vsel %vm2560_vm2, %v1266_v57, 0  ;;  %v1206_v60 = vld [vmem:[#allocation3 + $0x18] sm:$0xf] }
 0x237   : > { %v1487_v6 = vld [vmem:[#allocation3 + $0x20] sm:$0xff]  ;;  %v1488_v7 = vld [vmem:[#allocation3 + $0x28] sm:$0xf] }
 0x238   : > { %1495 = vrot.lane.b32.xlu1 %v1487_v6, %s2315_s7  ;;  %1497 = vrot.lane.b32.xlu0 %v1488_v7, %s2315_s7  ;;  %v1548_v18 = vld [vmem:[#allocation3 + $0x28] sm:$0xf]  ;;  %v1551_v13 = vsel %vm3199_vm7, %v1487_v6, 0  ;;  %v1519_v21 = vsel %vm3201_vm10, %v1487_v6, 0  ;;  %vm3202_vm7 = vcmp.ne.s16.totalorder %v2600_v3, 0  ;;  %vm3204_vm10 = vcmp.ne.s16.totalorder %v2465_v46, 0 }
 0x239   : > { %v1552_v15 = vsel %vm2518_vm15, %v1548_v18, 0  ;;  %v1516_v27 = vld [vmem:[#allocation3 + $0x28] sm:$0xf]  ;;  %v1207_v23 = vsel %vm3202_vm7, %v1235_v45, 0  ;;  %vm3203_vm4 = vmmov %vm3202_vm7  ;;  %v1337_v49 = vsel %vm3204_vm10, %v2826_v52, 0  ;;  %v1210_v45 = vsel %vm2602_vm5, %v1206_v60, 0 }
 0x23a   : > { %v1520_v37 = vsel %vm2560_vm2, %v1516_v27, 0  ;;  %v1456_v17 = vld [vmem:[#allocation3 + $0x28] sm:$0xf]  ;;  %v1459_v34 = vsel %vm3203_vm4, %v1487_v6, 0  ;;  %vm3205_vm7 = vmmov %vm3204_vm10  ;;  %vm3206_vm4 = vcmp.ne.s16.totalorder %v2516_v35, 0  ;;  %vm3208_vm10 = vcmp.ne.s16.totalorder %v2558_v53, 0 }
 0x23b   : > { %v1460_v30 = vsel %vm2602_vm5, %v1456_v17, 0  ;;  %v1489_v42 = vld [vmem:[#allocation3 + $0x30] sm:$0xff]  ;;  %v1490_v43 = vld [vmem:[#allocation3 + $0x38] sm:$0xf]  ;;  %v1589_v61 = vsel %vm3205_vm7, %v2835_v62, 0  ;;  %v1301_v28 = vsel %vm3206_vm4, %v1237_v41, 0  ;;  %vm3207_vm8 = vmmov %vm3206_vm4 }
 0x23c   : > { %1375 = vrot.lane.b32.xlu1 %v1367_v47, %s2311_s25  ;;  %1627 = vrot.lane.b32.xlu0 %v1619_v36, %s2311_s25  ;;  %v1550_v55 = vld [vmem:[#allocation3 + $0x38] sm:$0xf]  ;;  %v1553_v46 = vsel %vm3207_vm8, %v1489_v42, 0  ;;  %v1269_v32 = vsel %vm3208_vm10, %v1237_v41, 0  ;;  %vm3209_vm7 = vmmov %vm3208_vm10  ;;  %v2965_v6 = vld [vmem:[%s3175_s3] sm:$0xff]  ;;  %v1682_v47 = vsel %vm2644_vm0, %v1678_v2, 0 }
 0x23d   : > { %v1554_v56 = vsel %vm2518_vm15, %v1550_v55, 0  ;;  %v1518_v35 = vld [vmem:[#allocation3 + $0x38] sm:$0xf]  ;;  %v1521_v38 = vsel %vm3209_vm7, %v1489_v42, 0  ;;  %vm3210_vm15 = vcmp.ne.s16.totalorder %v2600_v3, 0  ;;  %v2178_v7 = vcombine.high %v2965_v6, %v2965_v6 }
 0x23e   : > { %v1522_v59 = vsel %vm2560_vm2, %v1518_v35, 0  ;;  %v1209_v63 = vsel %vm3210_vm15, %v1237_v41, 0  ;;  %v1458_v53 = vld [vmem:[#allocation3 + $0x38] sm:$0xf]  ;;  %vm3211_vm4 = vmmov %vm3210_vm15  ;;  %v1429_v3 = vsel %vm546_vm11, %v2826_v52, 0  ;;  %v1681_v36 = vsel %vm546_vm11, %v2835_v62, 0 }
 0x23f   : > { %v1461_v54 = vsel %vm3211_vm4, %v1489_v42, 0  ;;  %v1462_v0 = vsel %vm2602_vm5, %v1458_v53, 0  ;;  %2215 = vmatprep.mubr.msk.bf16.mxu0 %vm335_vm13, %v2178_v7  ;;  %2216 = vmatprep.mubr.msk.bf16.mxu1 %vm335_vm13, %v2178_v7  ;;  %vm3212_vm11 = vcmask 916480  }
 0x240   : > { %1343 = vrot.lane.b32.xlu1 %v1335_v8, %s2309_s22  ;;  %1595 = vrot.lane.b32.xlu0 %v1587_v10, %s2309_s22  ;;  %v2248_v8 = vpop.permute.xlu0 %2247  ;;  %v2253_v10 = vpop.permute.xlu1 %2252  ;;  %vm3213_vm0 = vmmov %vm3212_vm11 }
 0x241   : > { %v2254_v57 = vunpack.i.l.bf16 %v2253_v10  ;;  %vm3214_vm2 = vmmov %vm3213_vm0 }
 0x242   : > { %vm3215_vm5 = vmmov %vm3213_vm0 }
 0x244   : > { %1307 = vrot.lane.b32.xlu1 %v1299_v14, %s2310_s24  ;;  %1309 = vrot.lane.b32.xlu0 %v1300_v29, %s2310_s24  ;;  %v2987_v12 = vpop.permute.xlu0 %2257  ;;  %v2989_v19 = vpop.permute.xlu1 %2262 }
 0x248   : > { %1559 = vrot.lane.b32.xlu1 %v1551_v13, %s2310_s24  ;;  %1561 = vrot.lane.b32.xlu0 %v1552_v15, %s2310_s24  ;;  %v2993_v14 = vpop.permute.xlu1 %2272 }
 0x24c   : > { %1275 = vrot.lane.b32.xlu1 %v1267_v22, %s2308_s21  ;;  %1277 = vrot.lane.b32.xlu0 %v1268_v26, %s2308_s21 }
 0x250   : > { %1527 = vrot.lane.b32.xlu1 %v1519_v21, %s2308_s21  ;;  %1529 = vrot.lane.b32.xlu0 %v1520_v37, %s2308_s21 }
 0x254   : > { %1215 = vrot.lane.b32.xlu1 %v1207_v23, %s2313_s30  ;;  %1217 = vrot.lane.b32.xlu0 %v1208_v33, %s2313_s30 }
 0x258   : > { %1467 = vrot.lane.b32.xlu1 %v1459_v34, %s2313_s30  ;;  %1469 = vrot.lane.b32.xlu0 %v1460_v30, %s2313_s30 }
 0x25c   : > { %1435 = vrot.lane.b32.xlu1 %v1427_v39, %s2312_s29  ;;  %1687 = vrot.lane.b32.xlu0 %v1679_v40, %s2312_s29 }
 0x260   : > { %1407 = vrot.lane.b32.xlu1 %v2826_v52, %s2314_s6  ;;  %1659 = vrot.lane.b32.xlu0 %v2835_v62, %s2314_s6  ;;  %v2281_v52 = vpack.i.bf16 %v1682_v47, %v1680_v4  ;;  %v2991_v62 = vpop.permute.xlu0 %2267 }
 0x264   : > { %1247 = vrot.lane.b32.xlu1 %v1237_v41, %s2315_s7  ;;  %1249 = vrot.lane.b32.xlu0 %v1238_v25, %s2315_s7  ;;  %v2995_v29 = vpop.permute.xlu0 %2277 }
 0x268   : > { %1499 = vrot.lane.b32.xlu1 %v1489_v42, %s2315_s7  ;;  %1501 = vrot.lane.b32.xlu0 %v1490_v43, %s2315_s7 }
 0x26c   : > { %1379 = vrot.lane.b32.xlu1 %v1369_v44, %s2311_s25  ;;  %1631 = vrot.lane.b32.xlu0 %v1621_v48, %s2311_s25 }
 0x270   : > { %1347 = vrot.lane.b32.xlu1 %v1337_v49, %s2309_s22  ;;  %1599 = vrot.lane.b32.xlu0 %v1589_v61, %s2309_s22  ;;  %s2222_s22 = sshll.u32 %s3221_s20, 4 }
 0x271   : > { %s231_s25 = scalar_lea.vmem %s3177_s5, %s2222_s22 }
 0x274   : > { %1311 = vrot.lane.b32.xlu1 %v1301_v28, %s2310_s24  ;;  %1313 = vrot.lane.b32.xlu0 %v1302_v51, %s2310_s24 }
 0x278   : > { %1563 = vrot.lane.b32.xlu1 %v1553_v46, %s2310_s24  ;;  %1565 = vrot.lane.b32.xlu0 %v1554_v56, %s2310_s24  ;;  %v2249_v56 = vunpack.i.l.bf16 %v2248_v8 }
 0x27c   : > { %1279 = vrot.lane.b32.xlu1 %v1269_v32, %s2308_s21  ;;  %1281 = vrot.lane.b32.xlu0 %v1270_v58, %s2308_s21  ;;  %v2255_v32 = vunpack.i.h.bf16 %v2253_v10  ;;  %v2250_v58 = vunpack.i.h.bf16 %v2248_v8 }
 0x27e   : > { %v1666_v53 = vrot.slane %v2255_v32, 4 }
 0x280   : > { %1531 = vrot.lane.b32.xlu1 %v1521_v38, %s2308_s21  ;;  %1533 = vrot.lane.b32.xlu0 %v1522_v59, %s2308_s21  ;;  %v1412_v59 = vrot.slane %v2249_v56, 4 }
 0x284   : > { %1219 = vrot.lane.b32.xlu1 %v1209_v63, %s2313_s30  ;;  %1221 = vrot.lane.b32.xlu0 %v1210_v45, %s2313_s30  ;;  %v1664_v45 = vrot.slane %v2254_v57, 4  ;;  %v2269_v57 = vunpack.i.l.bf16 %v2991_v62 }
 0x288   : > { %1471 = vrot.lane.b32.xlu1 %v1461_v54, %s2313_s30  ;;  %1473 = vrot.lane.b32.xlu0 %v1462_v0, %s2313_s30  ;;  %v1414_v54 = vrot.slane %v2250_v58, 4 }
 0x28c   : > { %1439 = vrot.lane.b32.xlu1 %v1429_v3, %s2312_s29  ;;  %1691 = vrot.lane.b32.xlu0 %v1681_v36, %s2312_s29 }
 0x290   : > { %2282 = vrot.lane.b32.xlu1 %v2281_v52, %s2312_s29 }
 0x294   : > { %1747 = vperm.xlu1 %2245, %v1744_v24  }
 0x29a   : > { %v1404_v18 = vpop.permute.xlu1 %1403 }
 0x29b   : > { %v1411_v60 = vrot.slane %v1404_v18, 4 }
 0x29d   : > { %v1415_v2 = vsel %vm304_vm12, %v1411_v60, %v1412_v59  ;;  %v2275_v59 = vunpack.i.h.bf16 %v2993_v14 }
 0x29e   : > { %v1416_v8 = vsel %vm3212_vm11, %v1404_v18, %v1415_v2  ;;  %v2265_v18 = vunpack.i.h.bf16 %v2989_v19 }
 0x2a2   : > { %v1656_v13 = vpop.permute.xlu0 %1655  ;;  %v1244_v15 = vpop.permute.xlu1 %1243 }
 0x2a3   : > { %v1251_v22 = vrot.slane %v1244_v15, 4  ;;  %v1663_v63 = vrot.slane %v1656_v13, 4 }
 0x2a5   : > { %v1667_v7 = vsel %vm304_vm12, %v1663_v63, %v1664_v45  ;;  %v1638_v45 = vrot.slane %v2265_v18, 4 }
 0x2a6   : > { %v1246_v20 = vpop.permute.xlu0 %1245  ;;  %v1668_v52 = vsel %vm3213_vm0, %v1656_v13, %v1667_v7  ;;  %v2260_v13 = vunpack.i.h.bf16 %v2987_v12  ;;  %v1352_v7 = vrot.slane %v2269_v57, 4 }
 0x2a7   : > { %v1252_v26 = vrot.slane %v1246_v20, 4 }
 0x2a9   : > { %v1255_v27 = vsel %vm304_vm12, %v1251_v22, %v1252_v26 }
 0x2aa   : > { %v1496_v21 = vpop.permute.xlu1 %1495  ;;  %v1498_v37 = vpop.permute.xlu0 %1497  ;;  %v2999_v31 = vsel %vm335_vm13, %v1244_v15, %v1255_v27 }
 0x2ab   : > { %v1503_v23 = vrot.slane %v1496_v21, 4  ;;  %v1504_v33 = vrot.slane %v1498_v37, 4 }
 0x2ad   : > { %v1507_v17 = vsel %vm304_vm12, %v1503_v23, %v1504_v33  ;;  %v2264_v23 = vunpack.i.l.bf16 %v2989_v19  ;;  %v2274_v19 = vunpack.i.l.bf16 %v2993_v14 }
 0x2ae   : > { %v3002_v34 = vpop.permute.xlu1 %1375  ;;  %v3004_v30 = vpop.permute.xlu0 %1627  ;;  %v3007_v39 = vsel %vm335_vm13, %v1496_v21, %v1507_v17  ;;  %v2259_v21 = vunpack.i.l.bf16 %v2987_v12  ;;  %v2270_v12 = vunpack.i.h.bf16 %v2991_v62 }
 0x2af   : > { %v1383_v33 = vrot.slane %v3002_v34, 4  ;;  %v1635_v32 = vrot.slane %v3004_v30, 4  ;;  %v1636_v60 = vrot.slane %v2264_v23, 4  ;;  %v1604_v14 = vrot.slane %v2274_v19, 4 }
 0x2b0   : > { %v1384_v58 = vrot.slane %v2259_v21, 4 }
 0x2b2   : > { %v3009_v40 = vpop.permute.xlu1 %1343  ;;  %v3011_v41 = vpop.permute.xlu0 %1595 }
 0x2b3   : > { %v1351_v63 = vrot.slane %v3009_v40, 4 }
 0x2b6   : > { %v3013_v25 = vpop.permute.xlu1 %1307  ;;  %v3015_v42 = vpop.permute.xlu0 %1309 }
 0x2b7   : > { %v1316_v19 = vrot.slane %v3015_v42, 4 }
 0x2ba   : > { %v3017_v43 = vpop.permute.xlu1 %1559  ;;  %v3019_v44 = vpop.permute.xlu0 %1561 }
 0x2be   : > { %v3021_v48 = vpop.permute.xlu1 %1275  ;;  %v3023_v49 = vpop.permute.xlu0 %1277 }
 0x2c2   : > { %v3025_v61 = vpop.permute.xlu1 %1527  ;;  %v3027_v50 = vpop.permute.xlu0 %1529 }
 0x2c6   : > { %v3029_v28 = vpop.permute.xlu1 %1215  ;;  %v3031_v51 = vpop.permute.xlu0 %1217 }
 0x2ca   : > { %v3033_v55 = vpop.permute.xlu1 %1467  ;;  %v3035_v46 = vpop.permute.xlu0 %1469 }
 0x2ce   : > { %v3037_v35 = vpop.permute.xlu1 %1435  ;;  %v3039_v38 = vpop.permute.xlu0 %1687 }
 0x2d2   : > { %v1408_v0 = vpop.permute.xlu1 %1407  ;;  %v1660_v1 = vpop.permute.xlu0 %1659 }
 0x2d3   : > { %v1413_v3 = vrot.slane %v1408_v0, 4  ;;  %v1665_v4 = vrot.slane %v1660_v1, 4 }
 0x2d5   : > { %v1417_v47 = vsel %vm304_vm12, %v1413_v3, %v1414_v54  ;;  %v1669_v36 = vsel %vm304_vm12, %v1665_v4, %v1666_v53  ;;  %v1386_v53 = vrot.slane %v2260_v13, 4  ;;  %v1387_v54 = vsel %vm304_vm12, %v1383_v33, %v1384_v58 }
 0x2d6   : > { %v1418_v10 = vsel %vm3214_vm2, %v1408_v0, %v1417_v47  ;;  %v3048_v24 = vpop.permute.xlu1 %1247  ;;  %v1670_v15 = vsel %vm3215_vm5, %v1660_v1, %v1669_v36  ;;  %v3051_v20 = vpop.permute.xlu0 %1249  ;;  %v1603_v0 = vrot.slane %v3011_v41, 4  ;;  %v1639_v3 = vsel %vm304_vm12, %v1635_v32, %v1636_v60 }
 0x2d7   : > { %v2207_v22 = vcombine.low %v1416_v8, %v1418_v10  ;;  %v2208_v26 = vcombine.high %v1416_v8, %v1418_v10  ;;  %v2209_v27 = vcombine.low %v1668_v52, %v1670_v15  ;;  %v2210_v37 = vcombine.high %v1668_v52, %v1670_v15 }
 0x2d8   : > { %v1606_v36 = vrot.slane %v2275_v59, 4  ;;  %v1354_v8 = vrot.slane %v2270_v12, 4  ;;  %v1388_v62 = vsel %vm356_vm1, %v3002_v34, %v1387_v54  ;;  %v1355_v52 = vsel %vm304_vm12, %v1351_v63, %v1352_v7 }
 0x2d9   : > { %1939 = vmatprep.subr.bf16.mxu0 %v2208_v26  ;;  %1980 = vmatprep.subr.bf16.mxu1 %v2210_v37  ;;  %v1607_v26 = vsel %vm304_vm12, %v1603_v0, %v1604_v14  ;;  %v1356_v57 = vsel %vm396_vm14, %v3009_v40, %v1355_v52  ;;  %v1315_v32 = vrot.slane %v3013_v25, 4  ;;  %v1568_v12 = vrot.slane %v3019_v44, 4 }
 0x2da   : > { %v3058_v17 = vpop.permute.xlu1 %1499  ;;  %1940 = vmatpush1.bf16.msra.mxu0 %v2207_v22  ;;  %v3060_v56 = vpop.permute.xlu0 %1501  ;;  %1981 = vmatpush1.bf16.msra.mxu1 %v2209_v27  ;;  %v1640_v22 = vsel %vm356_vm1, %v3004_v30, %v1639_v3  ;;  %v1567_v30 = vrot.slane %v3017_v43, 4  ;;  %v1608_v63 = vsel %vm396_vm14, %v3011_v41, %v1607_v26  ;;  %v1284_v7 = vrot.slane %v3023_v49, 4 }
 0x2dc   : > { %v1571_v14 = vsel %vm304_vm12, %v1567_v30, %v1568_v12  ;;  %v1224_v30 = vrot.slane %v3031_v51, 4 }
 0x2de   : > { %v1380_v1 = vpop.permute.xlu1 %1379  ;;  %v1632_v2 = vpop.permute.xlu0 %1631 }
 0x2df   : > { %v1385_v4 = vrot.slane %v1380_v1, 4  ;;  %v1637_v47 = vrot.slane %v1632_v2, 4 }
 0x2e1   : > { %v1389_v10 = vsel %vm304_vm12, %v1385_v4, %v1386_v53  ;;  %v1641_v15 = vsel %vm304_vm12, %v1637_v47, %v1638_v45  ;;  %v1283_v45 = vrot.slane %v3021_v48, 4  ;;  %v1319_v47 = vsel %vm304_vm12, %v1315_v32, %v1316_v19 }
 0x2e2   : > { %v1390_v27 = vsel %vm356_vm1, %v1380_v1, %v1389_v10  ;;  %v1348_v21 = vpop.permute.xlu1 %1347  ;;  %v1642_v37 = vsel %vm356_vm1, %v1632_v2, %v1641_v15  ;;  %v1600_v23 = vpop.permute.xlu0 %1599 }
 0x2e3   : > { %v2203_v18 = vcombine.low %v1388_v62, %v1390_v27  ;;  %v2204_v13 = vcombine.high %v1388_v62, %v1390_v27  ;;  %v1353_v34 = vrot.slane %v1348_v21, 4  ;;  %v2205_v33 = vcombine.low %v1640_v22, %v1642_v37 }
 0x2e4   : > { %v2206_v58 = vcombine.high %v1640_v22, %v1642_v37  ;;  %v1605_v59 = vrot.slane %v1600_v23, 4  ;;  %v1287_v26 = vsel %vm304_vm12, %v1283_v45, %v1284_v7  ;;  %v1572_v27 = vsel %vm421_vm9, %v3017_v43, %v1571_v14 }
 0x2e5   : > { %v1357_v60 = vsel %vm304_vm12, %v1353_v34, %v1354_v8  ;;  %1941 = vmatprep.subr.bf16.mxu0 %v2204_v13  ;;  %v1254_v8 = vrot.slane %v3051_v20, 4  ;;  %v1320_v20 = vsel %vm421_vm9, %v3013_v25, %v1319_v47  ;;  %v1536_v37 = vrot.slane %v3027_v50, 4 }
 0x2e6   : > { %v1358_v40 = vsel %vm396_vm14, %v1348_v21, %v1357_v60  ;;  %v1312_v53 = vpop.permute.xlu1 %1311  ;;  %1942 = vmatpush1.bf16.msra.mxu0 %v2203_v18  ;;  %v1609_v54 = vsel %vm304_vm12, %v1605_v59, %v1606_v36  ;;  %1982 = vmatprep.subr.bf16.mxu1 %v2206_v58  ;;  %v1314_v0 = vpop.permute.xlu0 %1313  ;;  %v1253_v36 = vrot.slane %v3048_v24, 4  ;;  %v1535_v21 = vrot.slane %v3025_v61, 4 }
 0x2e7   : > { %v2199_v1 = vcombine.low %v1356_v57, %v1358_v40  ;;  %v2200_v42 = vcombine.high %v1356_v57, %v1358_v40  ;;  %v1317_v2 = vrot.slane %v1312_v53, 4  ;;  %v1610_v44 = vsel %vm396_vm14, %v1600_v23, %v1609_v54  ;;  %1983 = vmatpush1.bf16.msra.mxu1 %v2205_v33 }
 0x2e8   : > { %v2201_v3 = vcombine.low %v1608_v63, %v1610_v44  ;;  %v2202_v41 = vcombine.high %v1608_v63, %v1610_v44  ;;  %v1318_v4 = vrot.slane %v1314_v0, 4  ;;  %v1505_v18 = vrot.slane %v3058_v17, 4 }
 0x2e9   : > { %1943 = vmatprep.subr.bf16.mxu0 %v2200_v42  ;;  %v1257_v13 = vsel %vm304_vm12, %v1253_v36, %v1254_v8  ;;  %v1506_v34 = vrot.slane %v3060_v56, 4  ;;  %v1223_v59 = vrot.slane %v3029_v28, 4  ;;  %v1539_v19 = vsel %vm304_vm12, %v1535_v21, %v1536_v37 }
 0x2ea   : > { %v1564_v62 = vpop.permute.xlu1 %1563  ;;  %1944 = vmatpush1.bf16.msra.mxu0 %v2199_v1  ;;  %v1321_v52 = vsel %vm304_vm12, %v1317_v2, %v1318_v4  ;;  %1984 = vmatprep.subr.bf16.mxu1 %v2202_v41  ;;  %v1566_v10 = vpop.permute.xlu0 %1565  ;;  %v1258_v45 = vsel %vm335_vm13, %v3048_v24, %v1257_v13  ;;  %v1540_v42 = vsel %vm381_vm6, %v3025_v61, %v1539_v19  ;;  %v1475_v2 = vrot.slane %v3033_v55, 4 }
 0x2eb   : > { %v1569_v15 = vrot.slane %v1564_v62, 4  ;;  %1945 = vmatprep.subr.bf16.mxu0 %v2831_v11  ;;  %1985 = vmatpush1.bf16.msra.mxu1 %v2201_v3  ;;  %v1570_v49 = vrot.slane %v1566_v10, 4  ;;  %v1322_v22 = vsel %vm421_vm9, %v1312_v53, %v1321_v52  ;;  %v1509_v12 = vsel %vm304_vm12, %v1505_v18, %v1506_v34 }
 0x2ec   : > { %1986 = vmatprep.subr.bf16.mxu1 %v2841_v5  ;;  %v2192_v23 = vcombine.high %v1320_v20, %v1322_v22  ;;  %v2191_v58 = vcombine.low %v1320_v20, %v1322_v22  ;;  %v1227_v0 = vsel %vm304_vm12, %v1223_v59, %v1224_v30  ;;  %v2184_v1 = vcombine.high %v2999_v31, %v1258_v45 }
 0x2ed   : > { %v1573_v11 = vsel %vm304_vm12, %v1569_v15, %v1570_v49  ;;  %v1476_v44 = vrot.slane %v3035_v46, 4  ;;  %v1510_v41 = vsel %vm335_vm13, %v3058_v17, %v1509_v12  ;;  %v2183_v8 = vcombine.low %v2999_v31, %v1258_v45 }
 0x2ee   : > { %v1280_v5 = vpop.permute.xlu1 %1279  ;;  %1946 = vmatpush1.bf16.msra.mxu0 %v2829_v9  ;;  %v1282_v25 = vpop.permute.xlu0 %1281  ;;  %v1574_v33 = vsel %vm421_vm9, %v1564_v62, %v1573_v11  ;;  %v1288_v9 = vsel %vm381_vm6, %v3021_v48, %v1287_v26  ;;  %v2280_v61 = vunpack.i.h.bf16 %v2995_v29  ;;  %v2279_v62 = vunpack.i.l.bf16 %v2995_v29 }
 0x2ef   : > { %v1285_v43 = vrot.slane %v1280_v5, 4  ;;  %1947 = vmatprep.subr.bf16.mxu0 %v2192_v23  ;;  %1987 = vmatpush1.bf16.msra.mxu1 %v2839_v16  ;;  %v1286_v50 = vrot.slane %v1282_v25, 4  ;;  %v2193_v57 = vcombine.low %v1572_v27, %v1574_v33  ;;  %v2194_v32 = vcombine.high %v1572_v27, %v1574_v33 }
 0x2f0   : > { %v2186_v52 = vcombine.high %v3007_v39, %v1510_v41  ;;  %v1443_v10 = vrot.slane %v3037_v35, 4  ;;  %v1479_v17 = vsel %vm304_vm12, %v1475_v2, %v1476_v44  ;;  %v1228_v31 = vsel %vm306_vm3, %v3029_v28, %v1227_v0 }
 0x2f1   : > { %v1289_v56 = vsel %vm304_vm12, %v1285_v43, %v1286_v50  ;;  %1988 = vmatprep.subr.bf16.mxu1 %v2194_v32  ;;  %v2185_v21 = vcombine.low %v3007_v39, %v1510_v41  ;;  %v1444_v37 = vrot.slane %v2279_v62, 4  ;;  %v1446_v23 = vrot.slane %v2280_v61, 4 }
 0x2f2   : > { %v1532_v60 = vpop.permute.xlu1 %1531  ;;  %1948 = vmatpush1.bf16.msra.mxu0 %v2191_v58  ;;  %v1534_v16 = vpop.permute.xlu0 %1533  ;;  %v1290_v63 = vsel %vm381_vm6, %v1280_v5, %v1289_v56  ;;  %v1480_v28 = vsel %vm306_vm3, %v3033_v55, %v1479_v17  ;;  %v2177_v56 = vcombine.low %v2965_v6, %v2965_v6 }
 0x2f3   : > { %v1537_v40 = vrot.slane %v1532_v60, 4  ;;  %1989 = vmatpush1.bf16.msra.mxu1 %v2193_v57  ;;  %v1538_v51 = vrot.slane %v1534_v16, 4  ;;  %v2187_v53 = vcombine.low %v1288_v9, %v1290_v63  ;;  %v2188_v54 = vcombine.high %v1288_v9, %v1290_v63 }
 0x2f4   : > { %v1447_v34 = vsel %vm304_vm12, %v1443_v10, %v1444_v37  ;;  %v1695_v9 = vrot.slane %v3039_v38, 4 }
 0x2f5   : > { %v1541_v48 = vsel %vm304_vm12, %v1537_v40, %v1538_v51  ;;  %1949 = vmatprep.subr.bf16.mxu0 %v2188_v54 }
 0x2f6   : > { %v1220_v24 = vpop.permute.xlu1 %1219  ;;  %v1222_v7 = vpop.permute.xlu0 %1221  ;;  %1950 = vmatpush1.bf16.msra.mxu0 %v2187_v53  ;;  %v1542_v3 = vsel %vm381_vm6, %v1532_v60, %v1541_v48  ;;  %vm3216_vm6 = vcmask 908288  }
 0x2f7   : > { %v1225_v4 = vrot.slane %v1220_v24, 4  ;;  %v1226_v47 = vrot.slane %v1222_v7, 4  ;;  %1951 = vmatprep.subr.bf16.mxu0 %v2184_v1  ;;  %v2189_v14 = vcombine.low %v1540_v42, %v1542_v3  ;;  %v2190_v36 = vcombine.high %v1540_v42, %v1542_v3  ;;  %vm3217_vm9 = vmmov %vm3216_vm6 }
 0x2f8   : > { %v1448_v43 = vsel %vm3216_vm6, %v3037_v35, %v1447_v34  ;;  %vm3218_vm13 = vmmov %vm3216_vm6 }
 0x2f9   : > { %v1229_v46 = vsel %vm304_vm12, %v1225_v4, %v1226_v47  ;;  %1990 = vmatprep.subr.bf16.mxu1 %v2190_v36  ;;  %vm3219_vm14 = vmmov %vm3216_vm6 }
 0x2fa   : > { %v1472_v15 = vpop.permute.xlu1 %1471  ;;  %1991 = vmatpush1.bf16.msra.mxu1 %v2189_v14  ;;  %v1474_v49 = vpop.permute.xlu0 %1473  ;;  %1952 = vmatpush1.bf16.msra.mxu0 %v2183_v8  ;;  %v1230_v22 = vsel %vm306_vm3, %v1220_v24, %v1229_v46 }
 0x2fb   : > { %v1477_v26 = vrot.slane %v1472_v15, 4  ;;  %v1478_v29 = vrot.slane %v1474_v49, 4  ;;  %1992 = vmatprep.subr.bf16.mxu1 %v2186_v52  ;;  %v2179_v20 = vcombine.low %v1228_v31, %v1230_v22  ;;  %v2180_v27 = vcombine.high %v1228_v31, %v1230_v22 }
 0x2fd   : > { %v1481_v11 = vsel %vm304_vm12, %v1477_v26, %v1478_v29  ;;  %1953 = vmatprep.subr.bf16.mxu0 %v2180_v27 }
 0x2fe   : > { %v1440_v18 = vpop.permute.xlu1 %1439  ;;  %1993 = vmatpush1.bf16.msra.mxu1 %v2185_v21  ;;  %1954 = vmatpush1.bf16.msra.mxu0 %v2179_v20  ;;  %v1482_v13 = vsel %vm306_vm3, %v1472_v15, %v1481_v11  ;;  %v1692_v32 = vpop.permute.xlu0 %1691 }
 0x2ff   : > { %v1445_v5 = vrot.slane %v1440_v18, 4  ;;  %v2181_v25 = vcombine.low %v1480_v28, %v1482_v13  ;;  %v2182_v33 = vcombine.high %v1480_v28, %v1482_v13  ;;  %v1697_v60 = vrot.slane %v1692_v32, 4 }
 0x301   : > { %v1449_v39 = vsel %vm304_vm12, %v1445_v5, %v1446_v23  ;;  %1994 = vmatprep.subr.bf16.mxu1 %v2182_v33 }
 0x302   : > { %v1450_v50 = vsel %vm3217_vm9, %v1440_v18, %v1449_v39  ;;  %v2283_v57 = vpop.permute.xlu1 %2282  ;;  %1995 = vmatpush1.bf16.msra.mxu1 %v2181_v25 }
 0x303   : > { %v2211_v58 = vcombine.low %v1448_v43, %v1450_v50  ;;  %v2212_v55 = vcombine.high %v1448_v43, %v1450_v50  ;;  %v2285_v59 = vunpack.i.h.bf16 %v2283_v57  ;;  %v2284_v30 = vunpack.i.l.bf16 %v2283_v57 }
 0x305   : > { %v1698_v19 = vrot.slane %v2285_v59, 4  ;;  %v1696_v12 = vrot.slane %v2284_v30, 4  ;;  %1969 = vmatprep.subr.bf16.mxu0 %v2212_v55 }
 0x306   : > { %1970 = vmatpush2.bf16.msra.mxu0 %v2211_v58 }
 0x307   : > { %v1699_v35 = vsel %vm304_vm12, %v1695_v9, %v1696_v12  ;;  %v1701_v16 = vsel %vm304_vm12, %v1697_v60, %v1698_v19 }
 0x308   : > { %v1700_v63 = vsel %vm3218_vm13, %v3039_v38, %v1699_v35  ;;  %v1702_v45 = vsel %vm3219_vm14, %v1692_v32, %v1701_v16 }
 0x309   : > { %v2213_v40 = vcombine.low %v1700_v63, %v1702_v45  ;;  %v2214_v51 = vcombine.high %v1700_v63, %v1702_v45  ;;  %1972 = vmatmul.mubr.bf16.vlgmr.msra.gmra.mxu0 %v2177_v56 }
 0x30b   : > { %2010 = vmatprep.subr.bf16.mxu1 %v2214_v51 }
 0x30c   : > { %2011 = vmatpush2.bf16.msra.mxu1 %v2213_v40 }
 0x30f   : > { %2013 = vmatmul.mubr.bf16.vlgmr.msra.gmra.mxu1 %v2177_v56  ;;  %v1748_v6 = vpop.permute.xlu1 %1747 }
 0x3c9   : > { %v1973_v53 = vpop.f32.mrf.mxu0 }
 0x3ca   : > { %v1974_v54 = vadd.f32 %v1973_v53, %v1748_v6 }
 0x3cb   : > { %v1975_v0 = vpop.f32.mrf.mxu0 }
 0x3cc   : > { %v2021_v48 = vmax.f32 %v1974_v54, 0.0  ;;  %v1976_v1 = vadd.f32 %v1975_v0, %v1748_v6 }
 0x3cd   : > { %v1977_v38 = vpop.f32.mrf.mxu0 }
 0x3ce   : > { %2025 = vst [vmem:[%s231_s25] sm:$0xff] %v2021_v48  ;;  %v2022_v42 = vmax.f32 %v1976_v1, 0.0 }
 0x3cf   : > { %v2014_v2 = vpop.f32.mrf.mxu1  ;;  %v1978_v44 = vpop.f32.mrf.mxu0 }
 0x3d0   : > { %2026 = vst [vmem:[%s231_s25 + $0x8] sm:$0xff] %v2022_v42  ;;  %v2015_v24 = vadd.f32 %v2014_v2, %v1748_v6 }
 0x3d1   : > { %v2016_v7 = vpop.f32.mrf.mxu1 }
 0x3d2   : > { %v2023_v3 = vmax.f32 %v2015_v24, 0.0  ;;  %v2017_v41 = vadd.f32 %v2016_v7, %v1748_v6 }
 0x3d3   : > { %v2018_v4 = vpop.f32.mrf.mxu1 }
 0x3d4   : > { %2217 = vst [vmem:[%s231_s25 + $0x10] sm:$0xff] %v2023_v3  ;;  %v2024_v47 = vmax.f32 %v2017_v41, 0.0 }
 0x3d5   : > { %v2019_v14 = vpop.f32.mrf.mxu1 }
 0x3d6   : > { %2218 = vst [vmem:[%s231_s25 + $0x18] sm:$0xff] %v2024_v47 }
 0x3d7 PF: > { %s15_s18 = sadd.s32 1, %s2305_s18  }
 0x3d8   : > { %p12_p4 = scmp.ge.s32.totalorder %s15_s18, 4  }
 0x3da   :  { %14 = sbr.rel (!%p12_p4) target bundleno = 1 (0x1), region = 73 }

</bundles_post_ra>
